<compile_context>
chip_gen: v7x
topology: tpu7x:2x2x1
jax: 0.10.0
libtpu: 0.0.40
codegen_flags: <defaults>
</compile_context>

<pallas_src>
import jax
import jax.numpy as jnp
from jax.experimental import pallas as pl
from jax.experimental.pallas import tpu as pltpu


# ---------------------------------------------------------------------------
# Kernel
# ---------------------------------------------------------------------------
def _mlp_kernel(x_ref,
                w1, b1, w2, b2, w3, b3, w4, b4, w5, b5, w6, b6,
                o_ref):
    """Fused 6-layer MLP with ReLUs and residual add; one batch tile per step."""
    x0 = x_ref[...].astype(jnp.float32)

    def lin(h_f32, w_ref, b_ref):
        # bf16 MXU inputs, f32 accumulation; bias broadcast/add in f32.
        y = jnp.dot(h_f32.astype(jnp.bfloat16), w_ref[...],
                    preferred_element_type=jnp.float32)
        return y + b_ref[...]

    h = jnp.maximum(lin(x0, w1, b1), 0.0)
    h = jnp.maximum(lin(h, w2, b2), 0.0)
    h = jnp.maximum(lin(h, w3, b3), 0.0)
    h = jnp.maximum(lin(h, w4, b4), 0.0)
    h = jnp.maximum(lin(h, w5, b5), 0.0)
    h = lin(h, w6, b6)                       # no ReLU on the last layer
    o_ref[...] = (x0 + h).astype(o_ref.dtype)


# ---------------------------------------------------------------------------
# Wrapper
# ---------------------------------------------------------------------------
def _round_up(n, m):
    return ((n + m - 1) // m) * m


def _pad_to(a, shape):
    return jnp.pad(a, [(0, t - s) for s, t in zip(a.shape, shape)])


def mlp_forward(x, params, *, batch_tile=None):
    """x: (B, in_dim).  params: list of 6 (W, b), W is (in, out), b is (1, out)."""
    B, in_dim = x.shape
    out_dim = params[-1][0].shape[1]
    assert in_dim == out_dim, "residual x_ + x requires in_dim == out_dim"

    # ---- batch tile: keep (tb, 256) f32 intermediates near the vreg file,
    #      but give the grid multiple parallel steps when B is large.
    if batch_tile is None:
        tb = 256 if B >= 256 else _round_up(B, 8)
    else:
        tb = batch_tile
    B_pad = _round_up(B, tb)

    # ---- pad every feature dim to a multiple of 128 (lane-dense MXU / stores).
    dims = [in_dim] + [w.shape[1] for (w, _) in params]     # [in,256,128,64,128,256,out]
    pdims = [_round_up(d, 128) for d in dims]

    flat_params = []
    for li, (w, b) in enumerate(params):
        w_p = _pad_to(w, (pdims[li], pdims[li + 1])).astype(jnp.bfloat16)
        b_p = _pad_to(b, (1, pdims[li + 1])).astype(jnp.float32)
        flat_params += [w_p, b_p]

    x_p = _pad_to(x, (B_pad, pdims[0]))

    in_pad, out_pad = pdims[0], pdims[-1]
    x_spec = pl.BlockSpec((tb, in_pad), lambda i: (i, 0))
    # Constant index_map => weights/biases DMA'd once, resident across the grid.
    w_specs = [pl.BlockSpec(p.shape, lambda i: (0, 0)) for p in flat_params]
    out_spec = pl.BlockSpec((tb, out_pad), lambda i: (i, 0))

    out_p = pl.pallas_call(
        _mlp_kernel,
        out_shape=jax.ShapeDtypeStruct((B_pad, out_pad), x.dtype),
        grid_spec=pltpu.PrefetchScalarGridSpec(
            num_scalar_prefetch=0,
            grid=(B_pad // tb,),
            in_specs=[x_spec] + w_specs,
            out_specs=out_spec,
        ),
        compiler_params=pltpu.CompilerParams(
            dimension_semantics=("parallel",)),
    )(x_p, *flat_params)

    return out_p[:B, :out_dim]


# ---------------------------------------------------------------------------
# Init + reference
# ---------------------------------------------------------------------------
def init_mlp_params(key, in_dim, out_dim, dtype=jnp.float32):
    """Mimics torch.nn.Linear default init: U[-1/sqrt(fan_in), +1/sqrt(fan_in)]."""
    dims = [in_dim, 256, 128, 64, 128, 256, out_dim]
    params = []
    for li in range(6):
        fan_in, fan_out = dims[li], dims[li + 1]
        key, kw, kb = jax.random.split(key, 3)
        bound = 1.0 / (fan_in ** 0.5)
        w = jax.random.uniform(kw, (fan_in, fan_out), dtype, -bound, bound)
        b = jax.random.uniform(kb, (1, fan_out), dtype, -bound, bound)
        params.append((w, b))
    return params


def mlp_reference(x, params, *, matmul_dtype=jnp.bfloat16):
    """Pure-JAX reference with the same bf16-in / f32-accumulate matmuls."""
    h = x.astype(jnp.float32)
    for li, (w, b) in enumerate(params):
        h = jnp.dot(h.astype(matmul_dtype), w.astype(matmul_dtype),
                    preferred_element_type=jnp.float32) + b.astype(jnp.float32)
        if li < 5:
            h = jnp.maximum(h, 0.0)
    return (x.astype(jnp.float32) + h).astype(x.dtype)


# ---------------------------------------------------------------------------
# Test
# ---------------------------------------------------------------------------
if __name__ == "__main__":
    key = jax.random.PRNGKey(0)
    kx, kp = jax.random.split(key)

    # Residual requires in_dim == out_dim.  B=512 with tb=256 exercises a
    # multi-step parallel grid and the 128-lane padding path.
    B, in_dim, out_dim = 512, 32, 32
    x = jax.random.normal(kx, (B, in_dim), dtype=jnp.float32)
    params = init_mlp_params(kp, in_dim, out_dim)

    out = mlp_forward(x, params, batch_tile=256)
    out = jax.block_until_ready(out)

    # Check against a matching bf16-matmul reference (tight) and the full-f32
    # reference (loose, accounts for bf16 input rounding).
    ref_bf16 = mlp_reference(x, params, matmul_dtype=jnp.bfloat16)
    ref_f32 = mlp_reference(x, params, matmul_dtype=jnp.float32)

    assert out.shape == (B, out_dim)
    assert jnp.allclose(out, ref_bf16, atol=5e-3, rtol=5e-3), "mismatch vs bf16 reference"
    assert jnp.allclose(out, ref_f32, atol=5e-2, rtol=5e-2), "mismatch vs f32 reference"

    print("KERNEL_OK")
</pallas_src>

<mosaic_0001>
module attributes {stable_mosaic.version = 11 : i64} {
  func.func @_mlp_kernel(%arg0: i32, %arg1: memref<256x128xf32, #tpu.memory_space<vmem>>, %arg2: memref<128x256xbf16, #tpu.memory_space<vmem>>, %arg3: memref<1x256xf32, #tpu.memory_space<vmem>>, %arg4: memref<256x128xbf16, #tpu.memory_space<vmem>>, %arg5: memref<1x128xf32, #tpu.memory_space<vmem>>, %arg6: memref<128x128xbf16, #tpu.memory_space<vmem>>, %arg7: memref<1x128xf32, #tpu.memory_space<vmem>>, %arg8: memref<128x128xbf16, #tpu.memory_space<vmem>>, %arg9: memref<1x128xf32, #tpu.memory_space<vmem>>, %arg10: memref<128x256xbf16, #tpu.memory_space<vmem>>, %arg11: memref<1x256xf32, #tpu.memory_space<vmem>>, %arg12: memref<256x128xbf16, #tpu.memory_space<vmem>>, %arg13: memref<1x128xf32, #tpu.memory_space<vmem>>, %arg14: memref<256x128xf32, #tpu.memory_space<vmem>>) attributes {dimension_semantics = [#tpu.dimension_semantics<parallel>], iteration_bounds = array<i64: 2>, scalar_prefetch = 0 : i64, scratch_operands = 0 : i64, tpu.core_type = #tpu.core_type<tc>, window_params = [{transform_indices = @transform_0, window_bounds = array<i64: 256, 128>}, {pipeline_mode = #tpu.pipeline_mode<synchronous>, transform_indices = @transform_1, window_bounds = array<i64: 128, 256>}, {pipeline_mode = #tpu.pipeline_mode<synchronous>, transform_indices = @transform_2, window_bounds = array<i64: 1, 256>}, {pipeline_mode = #tpu.pipeline_mode<synchronous>, transform_indices = @transform_3, window_bounds = array<i64: 256, 128>}, {pipeline_mode = #tpu.pipeline_mode<synchronous>, transform_indices = @transform_4, window_bounds = array<i64: 1, 128>}, {pipeline_mode = #tpu.pipeline_mode<synchronous>, transform_indices = @transform_5, window_bounds = array<i64: 128, 128>}, {pipeline_mode = #tpu.pipeline_mode<synchronous>, transform_indices = @transform_6, window_bounds = array<i64: 1, 128>}, {pipeline_mode = #tpu.pipeline_mode<synchronous>, transform_indices = @transform_7, window_bounds = array<i64: 128, 128>}, {pipeline_mode = #tpu.pipeline_mode<synchronous>, transform_indices = @transform_8, window_bounds = array<i64: 1, 128>}, {pipeline_mode = #tpu.pipeline_mode<synchronous>, transform_indices = @transform_9, window_bounds = array<i64: 128, 256>}, {pipeline_mode = #tpu.pipeline_mode<synchronous>, transform_indices = @transform_10, window_bounds = array<i64: 1, 256>}, {pipeline_mode = #tpu.pipeline_mode<synchronous>, transform_indices = @transform_11, window_bounds = array<i64: 256, 128>}, {pipeline_mode = #tpu.pipeline_mode<synchronous>, transform_indices = @transform_12, window_bounds = array<i64: 1, 128>}, {transform_indices = @transform_13, window_bounds = array<i64: 256, 128>}]} {
    %c0 = arith.constant 0 : index
    %c0_0 = arith.constant 0 : index
    %0 = vector.load %arg1[%c0, %c0_0] : memref<256x128xf32, #tpu.memory_space<vmem>>, vector<256x128xf32>
    %1 = arith.truncf %0 : vector<256x128xf32> to vector<256x128xbf16>
    %c0_1 = arith.constant 0 : index
    %c0_2 = arith.constant 0 : index
    %2 = vector.load %arg2[%c0_1, %c0_2] : memref<128x256xbf16, #tpu.memory_space<vmem>>, vector<128x256xbf16>
    %cst = arith.constant dense<0.000000e+00> : vector<256x256xf32>
    %3 = tpu.matmul %1, %2, %cst {dimension_numbers = #tpu.dot_dimension_numbers<[1], [0], [0], [1], [0, 0, 1, 1], [], []>} : vector<256x128xbf16>, vector<128x256xbf16>, vector<256x256xf32> -> vector<256x256xf32>
    %c0_3 = arith.constant 0 : index
    %c0_4 = arith.constant 0 : index
    %4 = vector.load %arg3[%c0_3, %c0_4] : memref<1x256xf32, #tpu.memory_space<vmem>>, vector<1x256xf32>
    %5 = vector.broadcast %4 : vector<1x256xf32> to vector<256x256xf32>
    %6 = arith.addf %3, %5 : vector<256x256xf32>
    %cst_5 = arith.constant 0.000000e+00 : f32
    %7 = vector.broadcast %cst_5 : f32 to vector<256x256xf32>
    %8 = arith.maximumf %6, %7 : vector<256x256xf32>
    %9 = arith.truncf %8 : vector<256x256xf32> to vector<256x256xbf16>
    %c0_6 = arith.constant 0 : index
    %c0_7 = arith.constant 0 : index
    %10 = vector.load %arg4[%c0_6, %c0_7] : memref<256x128xbf16, #tpu.memory_space<vmem>>, vector<256x128xbf16>
    %cst_8 = arith.constant dense<0.000000e+00> : vector<256x128xf32>
    %11 = tpu.matmul %9, %10, %cst_8 {dimension_numbers = #tpu.dot_dimension_numbers<[1], [0], [0], [1], [0, 0, 1, 1], [], []>} : vector<256x256xbf16>, vector<256x128xbf16>, vector<256x128xf32> -> vector<256x128xf32>
    %c0_9 = arith.constant 0 : index
    %c0_10 = arith.constant 0 : index
    %12 = vector.load %arg5[%c0_9, %c0_10] : memref<1x128xf32, #tpu.memory_space<vmem>>, vector<1x128xf32>
    %13 = vector.broadcast %12 : vector<1x128xf32> to vector<256x128xf32>
    %14 = arith.addf %11, %13 : vector<256x128xf32>
    %cst_11 = arith.constant 0.000000e+00 : f32
    %15 = vector.broadcast %cst_11 : f32 to vector<256x128xf32>
    %16 = arith.maximumf %14, %15 : vector<256x128xf32>
    %17 = arith.truncf %16 : vector<256x128xf32> to vector<256x128xbf16>
    %c0_12 = arith.constant 0 : index
    %c0_13 = arith.constant 0 : index
    %18 = vector.load %arg6[%c0_12, %c0_13] : memref<128x128xbf16, #tpu.memory_space<vmem>>, vector<128x128xbf16>
    %cst_14 = arith.constant dense<0.000000e+00> : vector<256x128xf32>
    %19 = tpu.matmul %17, %18, %cst_14 {dimension_numbers = #tpu.dot_dimension_numbers<[1], [0], [0], [1], [0, 0, 1, 1], [], []>} : vector<256x128xbf16>, vector<128x128xbf16>, vector<256x128xf32> -> vector<256x128xf32>
    %c0_15 = arith.constant 0 : index
    %c0_16 = arith.constant 0 : index
    %20 = vector.load %arg7[%c0_15, %c0_16] : memref<1x128xf32, #tpu.memory_space<vmem>>, vector<1x128xf32>
    %21 = vector.broadcast %20 : vector<1x128xf32> to vector<256x128xf32>
    %22 = arith.addf %19, %21 : vector<256x128xf32>
    %cst_17 = arith.constant 0.000000e+00 : f32
    %23 = vector.broadcast %cst_17 : f32 to vector<256x128xf32>
    %24 = arith.maximumf %22, %23 : vector<256x128xf32>
    %25 = arith.truncf %24 : vector<256x128xf32> to vector<256x128xbf16>
    %c0_18 = arith.constant 0 : index
    %c0_19 = arith.constant 0 : index
    %26 = vector.load %arg8[%c0_18, %c0_19] : memref<128x128xbf16, #tpu.memory_space<vmem>>, vector<128x128xbf16>
    %cst_20 = arith.constant dense<0.000000e+00> : vector<256x128xf32>
    %27 = tpu.matmul %25, %26, %cst_20 {dimension_numbers = #tpu.dot_dimension_numbers<[1], [0], [0], [1], [0, 0, 1, 1], [], []>} : vector<256x128xbf16>, vector<128x128xbf16>, vector<256x128xf32> -> vector<256x128xf32>
    %c0_21 = arith.constant 0 : index
    %c0_22 = arith.constant 0 : index
    %28 = vector.load %arg9[%c0_21, %c0_22] : memref<1x128xf32, #tpu.memory_space<vmem>>, vector<1x128xf32>
    %29 = vector.broadcast %28 : vector<1x128xf32> to vector<256x128xf32>
    %30 = arith.addf %27, %29 : vector<256x128xf32>
    %cst_23 = arith.constant 0.000000e+00 : f32
    %31 = vector.broadcast %cst_23 : f32 to vector<256x128xf32>
    %32 = arith.maximumf %30, %31 : vector<256x128xf32>
    %33 = arith.truncf %32 : vector<256x128xf32> to vector<256x128xbf16>
    %c0_24 = arith.constant 0 : index
    %c0_25 = arith.constant 0 : index
    %34 = vector.load %arg10[%c0_24, %c0_25] : memref<128x256xbf16, #tpu.memory_space<vmem>>, vector<128x256xbf16>
    %cst_26 = arith.constant dense<0.000000e+00> : vector<256x256xf32>
    %35 = tpu.matmul %33, %34, %cst_26 {dimension_numbers = #tpu.dot_dimension_numbers<[1], [0], [0], [1], [0, 0, 1, 1], [], []>} : vector<256x128xbf16>, vector<128x256xbf16>, vector<256x256xf32> -> vector<256x256xf32>
    %c0_27 = arith.constant 0 : index
    %c0_28 = arith.constant 0 : index
    %36 = vector.load %arg11[%c0_27, %c0_28] : memref<1x256xf32, #tpu.memory_space<vmem>>, vector<1x256xf32>
    %37 = vector.broadcast %36 : vector<1x256xf32> to vector<256x256xf32>
    %38 = arith.addf %35, %37 : vector<256x256xf32>
    %cst_29 = arith.constant 0.000000e+00 : f32
    %39 = vector.broadcast %cst_29 : f32 to vector<256x256xf32>
    %40 = arith.maximumf %38, %39 : vector<256x256xf32>
    %41 = arith.truncf %40 : vector<256x256xf32> to vector<256x256xbf16>
    %c0_30 = arith.constant 0 : index
    %c0_31 = arith.constant 0 : index
    %42 = vector.load %arg12[%c0_30, %c0_31] : memref<256x128xbf16, #tpu.memory_space<vmem>>, vector<256x128xbf16>
    %cst_32 = arith.constant dense<0.000000e+00> : vector<256x128xf32>
    %43 = tpu.matmul %41, %42, %cst_32 {dimension_numbers = #tpu.dot_dimension_numbers<[1], [0], [0], [1], [0, 0, 1, 1], [], []>} : vector<256x256xbf16>, vector<256x128xbf16>, vector<256x128xf32> -> vector<256x128xf32>
    %c0_33 = arith.constant 0 : index
    %c0_34 = arith.constant 0 : index
    %44 = vector.load %arg13[%c0_33, %c0_34] : memref<1x128xf32, #tpu.memory_space<vmem>>, vector<1x128xf32>
    %45 = vector.broadcast %44 : vector<1x128xf32> to vector<256x128xf32>
    %46 = arith.addf %43, %45 : vector<256x128xf32>
    %47 = arith.addf %0, %46 : vector<256x128xf32>
    %c0_35 = arith.constant 0 : index
    %c0_36 = arith.constant 0 : index
    %48 = vector.load %arg14[%c0_35, %c0_36] : memref<256x128xf32, #tpu.memory_space<vmem>>, vector<256x128xf32>
    tpu.vector_store %arg14[%c0_35, %c0_36], %47 {strides = array<i32>} : memref<256x128xf32, #tpu.memory_space<vmem>>, vector<256x128xf32>,
    return
  }
  func.func @transform_0(%arg0: i32) -> (i32, i32) {
    %c0_i32 = arith.constant 0 : i32
    %c0_i32_0 = arith.constant 0 : i32
    return %arg0, %c0_i32 : i32, i32
  }
  func.func @transform_1(%arg0: i32) -> (i32, i32) {
    %c0_i32 = arith.constant 0 : i32
    %c0_i32_0 = arith.constant 0 : i32
    %c0_i32_1 = arith.constant 0 : i32
    return %c0_i32, %c0_i32_0 : i32, i32
  }
  func.func @transform_2(%arg0: i32) -> (i32, i32) {
    %c0_i32 = arith.constant 0 : i32
    %c0_i32_0 = arith.constant 0 : i32
    %c0_i32_1 = arith.constant 0 : i32
    return %c0_i32, %c0_i32_0 : i32, i32
  }
  func.func @transform_3(%arg0: i32) -> (i32, i32) {
    %c0_i32 = arith.constant 0 : i32
    %c0_i32_0 = arith.constant 0 : i32
    %c0_i32_1 = arith.constant 0 : i32
    return %c0_i32, %c0_i32_0 : i32, i32
  }
  func.func @transform_4(%arg0: i32) -> (i32, i32) {
    %c0_i32 = arith.constant 0 : i32
    %c0_i32_0 = arith.constant 0 : i32
    %c0_i32_1 = arith.constant 0 : i32
    return %c0_i32, %c0_i32_0 : i32, i32
  }
  func.func @transform_5(%arg0: i32) -> (i32, i32) {
    %c0_i32 = arith.constant 0 : i32
    %c0_i32_0 = arith.constant 0 : i32
    %c0_i32_1 = arith.constant 0 : i32
    return %c0_i32, %c0_i32_0 : i32, i32
  }
  func.func @transform_6(%arg0: i32) -> (i32, i32) {
    %c0_i32 = arith.constant 0 : i32
    %c0_i32_0 = arith.constant 0 : i32
    %c0_i32_1 = arith.constant 0 : i32
    return %c0_i32, %c0_i32_0 : i32, i32
  }
  func.func @transform_7(%arg0: i32) -> (i32, i32) {
    %c0_i32 = arith.constant 0 : i32
    %c0_i32_0 = arith.constant 0 : i32
    %c0_i32_1 = arith.constant 0 : i32
    return %c0_i32, %c0_i32_0 : i32, i32
  }
  func.func @transform_8(%arg0: i32) -> (i32, i32) {
    %c0_i32 = arith.constant 0 : i32
    %c0_i32_0 = arith.constant 0 : i32
    %c0_i32_1 = arith.constant 0 : i32
    return %c0_i32, %c0_i32_0 : i32, i32
  }
  func.func @transform_9(%arg0: i32) -> (i32, i32) {
    %c0_i32 = arith.constant 0 : i32
    %c0_i32_0 = arith.constant 0 : i32
    %c0_i32_1 = arith.constant 0 : i32
    return %c0_i32, %c0_i32_0 : i32, i32
  }
  func.func @transform_10(%arg0: i32) -> (i32, i32) {
    %c0_i32 = arith.constant 0 : i32
    %c0_i32_0 = arith.constant 0 : i32
    %c0_i32_1 = arith.constant 0 : i32
    return %c0_i32, %c0_i32_0 : i32, i32
  }
  func.func @transform_11(%arg0: i32) -> (i32, i32) {
    %c0_i32 = arith.constant 0 : i32
    %c0_i32_0 = arith.constant 0 : i32
    %c0_i32_1 = arith.constant 0 : i32
    return %c0_i32, %c0_i32_0 : i32, i32
  }
  func.func @transform_12(%arg0: i32) -> (i32, i32) {
    %c0_i32 = arith.constant 0 : i32
    %c0_i32_0 = arith.constant 0 : i32
    %c0_i32_1 = arith.constant 0 : i32
    return %c0_i32, %c0_i32_0 : i32, i32
  }
  func.func @transform_13(%arg0: i32) -> (i32, i32) {
    %c0_i32 = arith.constant 0 : i32
    %c0_i32_0 = arith.constant 0 : i32
    return %arg0, %c0_i32 : i32, i32
  }
}

</mosaic_0001>

<bundles_post_ra>
// kernel: tpu_custom_call.1
= control target key start
LH: loop header
LB: loop body
LE: loop exit
PB: predicated region body
PF: predicated region fallthrough
CT: control target
= control target key end

     0   :  { %s4665_s0 = inlined_call_operand.hbm [shape: f32[512,128], index: 0, kind: input, shape index: {}]   ;;  %s4666_s1 = inlined_call_operand.hbm [shape: bf16[128,256], index: 1, kind: input, shape index: {}]   ;;  %s4667_s2 = inlined_call_operand.vmem [shape: f32[1,256], index: 2, kind: input, shape index: {}]   ;;  %s4668_s3 = inlined_call_operand.hbm [shape: bf16[256,128], index: 3, kind: input, shape index: {}]   ;;  %s4669_s4 = inlined_call_operand.vmem [shape: f32[1,128], index: 4, kind: input, shape index: {}]   ;;  %s4670_s5 = inlined_call_operand.hbm [shape: bf16[128,128], index: 5, kind: input, shape index: {}]   ;;  %s4671_s6 = inlined_call_operand.vmem [shape: f32[1,128], index: 6, kind: input, shape index: {}]   ;;  %s4672_s7 = inlined_call_operand.hbm [shape: bf16[128,128], index: 7, kind: input, shape index: {}]   ;;  %s4673_s8 = inlined_call_operand.vmem [shape: f32[1,128], index: 8, kind: input, shape index: {}]   ;;  %s4674_s9 = inlined_call_operand.hbm [shape: bf16[128,256], index: 9, kind: input, shape index: {}]   ;;  %s4675_s10 = inlined_call_operand.vmem [shape: f32[1,256], index: 10, kind: input, shape index: {}]   ;;  %s4676_s11 = inlined_call_operand.hbm [shape: bf16[256,128], index: 11, kind: input, shape index: {}]   ;;  %s4677_s12 = inlined_call_operand.vmem [shape: f32[1,128], index: 12, kind: input, shape index: {}]   ;;  %s4678_s13 = inlined_call_operand.hbm [shape: f32[512,128], index: 13, kind: output, shape index: {}]  }
   0x1   :  { %4690 = sst [smem:[#allocation20_spill]] %s4666_s1 }
   0x2   :  { %4691 = sst [smem:[#allocation21_spill]] %s4671_s6 }
   0x3   :  { %4692 = sst [smem:[#allocation22_spill]] %s4673_s8 }
   0x4   :  { %4693 = sst [smem:[#allocation23_spill]] %s4675_s10 }
   0x5   :  { %4694 = sst [smem:[#allocation24_spill]] %s4677_s12 }
   0x6   :  { %4695 = sst [smem:[#allocation25_spill]] %s4678_s13 }
   0x7   :  { %18 = vsyncpa [#allocation3], 0 }
   0x8   :  { %20 = vsyncpa [#allocation3 + $0x1], 0 }
   0x9   :  { %21 = vsyncpa [#allocation6], 0 }
   0xa   :  { %22 = vsyncpa [#allocation9], 0 }
   0xb   :  { %23 = vsyncpa [#allocation12], 0 }
   0xc   :  { %24 = vsyncpa [#allocation4], 0 }
   0xd   :  { %26 = vsyncpa [#allocation4 + $0x1], 0  ;;  %s3884_s25 = smov 0   ;;  %s3886_s26 = smov 0  }
   0xe   :  { %s3888_s27 = smov 0   ;;  %s3890_s28 = smov 0  }
   0xf LB: > { %s3799_s29 = smov [#allocation5]   ;;  %s3905_s14 = sadd.s32 4294967295, %s3797_s28   ;;  %s3797_s28 = sphi %s3890_s28, %s4728_s28   ;;  %s3793_s27 = sphi %s3888_s27, %s4727_s27   ;;  %s3789_s26 = sphi %s3886_s26, %s4726_s26   ;;  %s3785_s25 = sphi %s3884_s25, %s4725_s25  }
  0x10   : > { %s353_s30 = sshll.u32 %s3799_s29, 4  ;;  %p2800_p0 = scmp.ge.s32.totalorder %s3797_s28, 1  ;;  %s3910_s30 = int_to_ptr.vmem [resolvable:$true] %s353_s30 }
  0x11   : > { %p4682_p1 = scmp.eq.s32.totalorder %s3905_s14, 0  ;;  %p341_p2 = scmp.lt.s32.totalorder %s3797_s28, 3 }
  0x12   : > { %s3800_s17 = smov [#allocation8]   ;;  %s3801_s19 = smov [#allocation11]  }
  0x13   : > { %p3912_p3 = pnand %p2800_p0, %p341_p2  ;;  %s385_s18 = sshll.u32 %s3800_s17, 4  ;;  %s3925_s18 = int_to_ptr.vmem [resolvable:$true] %s385_s18 }
  0x14   : > { %s3927_s20 = sshll.u32 %s3801_s19, 4  ;;  %s4698_s1 = sld [smem:[#allocation20_spill]]  ;;  %s418_s20 = int_to_ptr.vmem [resolvable:$true] %s3927_s20 }
  0x15   : > { %s4696_s15 = scalar_select %p3912_p3, 1, 0 }
  0x16   : > { %p3307_p5 = pneg %p3912_p3 }
  0x18   : > { %p3921_p6 = pnand %p3307_p5, %p4682_p1 }
  0x1a   : > { %s3521_s23 = scalar_lea.hbm %s4698_s1, 2048  ;;  %p3937_p8 = pneg %p3921_p6 }
  0x1b   : > { %p3522_p7 = scmp.ne.s32.totalorder %s4698_s1, %s3521_s23  ;;  %p3528_p11 = scmp.lt.u32.totalorder %s3521_s23, %s4698_s1 }
  0x1d   : > { %p3524_p9 = pnand %p3937_p8, %p3522_p7 }
  0x1f   : > { %p3525_p10 = pneg %p3524_p9 }
  0x21   : > { %p3530_p12 = pnand %p3528_p11, %p3525_p10 }
  0x23   : > { %3533 = shalt.err (!%p3530_p12)
}
  0x24   : > { %s3534_s21 = scalar_lea.vmem %s3910_s30, 2048  ;;  %p3542_p5 = scmp.lt.s32.totalorder %s3910_s30, %s3910_s30 }
  0x25   : > { %p3535_p13 = scmp.ne.s32.totalorder %s3910_s30, %s3534_s21  ;;  %p3543_p4 = scmp.lt.s32.totalorder %s3534_s21, %s3534_s21 }
  0x27   : > { %p3537_p0 = pnand %p3535_p13, %p3937_p8  ;;  %p3544_p7 = por %p3543_p4, %p3542_p5 }
  0x29   : > { %p3538_p2 = pneg %p3537_p0 }
  0x2b   : > { %p3545_p9 = pnand %p3544_p7, %p3538_p2 }
  0x2d   : > { %3548 = shalt.err (!%p3545_p9)
}
  0x2e   : > { %s4680_s22 = smov 128   ;;  %s4688_s23 = smov 8  }
  0x2f   : > { %3310 = dma.hbm_to_vmem [thread:$0]  (!%p3921_p6), %s4698_s1, 2048, %s3910_s30, [#allocation6], %s4680_s22, %s4680_s22, %s4688_s23  }
  0x30   : > { %s3549_s21 = scalar_lea.hbm %s4670_s5, 1024 }
  0x31   : > { %p3550_p4 = scmp.ne.s32.totalorder %s4670_s5, %s3549_s21  ;;  %p3556_p12 = scmp.lt.u32.totalorder %s3549_s21, %s4670_s5 }
  0x33   : > { %p3552_p10 = pnand %p3550_p4, %p3937_p8 }
  0x35   : > { %p3553_p11 = pneg %p3552_p10 }
  0x37   : > { %p3558_p13 = pnand %p3556_p12, %p3553_p11 }
  0x39   : > { %3561 = shalt.err (!%p3558_p13)
}
  0x3a   : > { %s3562_s30 = scalar_lea.vmem %s3925_s18, 1024  ;;  %p3570_p7 = scmp.lt.s32.totalorder %s3925_s18, %s3925_s18 }
  0x3b   : > { %p3563_p0 = scmp.ne.s32.totalorder %s3925_s18, %s3562_s30  ;;  %p3571_p9 = scmp.lt.s32.totalorder %s3562_s30, %s3562_s30 }
  0x3d   : > { %p3565_p2 = pnand %p3563_p0, %p3937_p8  ;;  %p3572_p4 = por %p3571_p9, %p3570_p7 }
  0x3f   : > { %p3566_p5 = pneg %p3565_p2 }
  0x41   : > { %p3573_p10 = pnand %p3572_p4, %p3566_p5 }
  0x43   : > { %3576 = shalt.err (!%p3573_p10)
}
  0x44   : > { %s4684_s10 = smov 64   ;;  %s4686_s6 = smov 4  }
  0x45   : > { %3316 = dma.hbm_to_vmem [thread:$0]  (!%p3921_p6), %s4670_s5, 1024, %s3925_s18, [#allocation9], %s4684_s10, %s4684_s10, %s4686_s6  }
  0x46   : > { %s3577_s17 = scalar_lea.hbm %s4674_s9, 2048 }
  0x47   : > { %p3578_p11 = scmp.ne.s32.totalorder %s4674_s9, %s3577_s17  ;;  %p3584_p0 = scmp.lt.u32.totalorder %s3577_s17, %s4674_s9 }
  0x49   : > { %p3580_p12 = pnand %p3578_p11, %p3937_p8 }
  0x4b   : > { %p3581_p13 = pneg %p3580_p12 }
  0x4d   : > { %p3586_p2 = pnand %p3584_p0, %p3581_p13 }
  0x4f   : > { %3589 = shalt.err (!%p3586_p2)
}
  0x50   : > { %s3590_s8 = scalar_lea.vmem %s418_s20, 2048  ;;  %p3598_p4 = scmp.lt.s32.totalorder %s418_s20, %s418_s20 }
  0x51   : > { %p3591_p5 = scmp.ne.s32.totalorder %s418_s20, %s3590_s8  ;;  %p3599_p10 = scmp.lt.s32.totalorder %s3590_s8, %s3590_s8 }
  0x53   : > { %p3593_p7 = pnand %p3591_p5, %p3937_p8  ;;  %p3600_p1 = por %p3599_p10, %p3598_p4 }
  0x55   : > { %p3594_p9 = pneg %p3593_p7 }
  0x57   : > { %p3601_p3 = pnand %p3600_p1, %p3594_p9 }
  0x59   : > { %3604 = shalt.err (!%p3601_p3)
}
  0x5a   : > { %s4700_s18 = smov 128   ;;  %s3806_s24 = smov [#allocation7]  }
  0x5b   : > { %3322 = dma.hbm_to_vmem [thread:$0]  (!%p3921_p6), %s4674_s9, 2048, %s418_s20, [#allocation12], %s4700_s18, %s4700_s18, %s4688_s23  }
  0x5c   : > { %s369_s29 = sshll.u32 %s3806_s24, 4  ;;  %s3807_s17 = smov [#allocation10]   ;;  %s370_s29 = int_to_ptr.vmem [resolvable:$true] %s369_s29 }
  0x5d   : > { %s401_s19 = sshll.u32 %s3807_s17, 4  ;;  %s3605_s8 = scalar_lea.hbm %s4668_s3, 2048  ;;  %s402_s19 = int_to_ptr.vmem [resolvable:$true] %s401_s19 }
  0x5e   : > { %p3606_p1 = scmp.ne.s32.totalorder %s4668_s3, %s3605_s8  ;;  %p3612_p12 = scmp.lt.u32.totalorder %s3605_s8, %s4668_s3 }
  0x60   : > { %p3608_p3 = pnand %p3606_p1, %p3937_p8 }
  0x62   : > { %p3609_p11 = pneg %p3608_p3 }
  0x64   : > { %p3614_p13 = pnand %p3612_p12, %p3609_p11 }
  0x66   : > { %3617 = shalt.err (!%p3614_p13)
}
  0x67   : > { %s3618_s20 = scalar_lea.vmem %s370_s29, 2048  ;;  %p3626_p7 = scmp.lt.s32.totalorder %s370_s29, %s370_s29 }
  0x68   : > { %p3619_p0 = scmp.ne.s32.totalorder %s370_s29, %s3618_s20  ;;  %p3627_p9 = scmp.lt.s32.totalorder %s3618_s20, %s3618_s20 }
  0x6a   : > { %p3621_p2 = pnand %p3619_p0, %p3937_p8  ;;  %p3628_p4 = por %p3627_p9, %p3626_p7 }
  0x6c   : > { %p3622_p5 = pneg %p3621_p2 }
  0x6e   : > { %p3629_p10 = pnand %p3628_p4, %p3622_p5 }
  0x70   : > { %3632 = shalt.err (!%p3629_p10)
}
  0x71   : > { %s4701_s10 = smov 4   ;;  %s4702_s6 = smov 64  }
  0x72   : > { %3313 = dma.hbm_to_vmem [thread:$0]  (!%p3921_p6), %s4668_s3, 2048, %s370_s29, [#allocation6], %s4702_s6, %s4702_s6, %s4701_s10  }
  0x73   : > { %s3633_s21 = scalar_lea.hbm %s4672_s7, 1024 }
  0x74   : > { %p3634_p1 = scmp.ne.s32.totalorder %s4672_s7, %s3633_s21  ;;  %p3640_p12 = scmp.lt.u32.totalorder %s3633_s21, %s4672_s7 }
  0x76   : > { %p3636_p3 = pnand %p3634_p1, %p3937_p8 }
  0x78   : > { %p3637_p11 = pneg %p3636_p3 }
  0x7a   : > { %p3642_p13 = pnand %p3640_p12, %p3637_p11 }
  0x7c   : > { %3645 = shalt.err (!%p3642_p13)
}
  0x7d   : > { %s3646_s1 = scalar_lea.vmem %s402_s19, 1024  ;;  %p3654_p7 = scmp.lt.s32.totalorder %s402_s19, %s402_s19 }
  0x7e   : > { %p3647_p0 = scmp.ne.s32.totalorder %s402_s19, %s3646_s1  ;;  %p3655_p9 = scmp.lt.s32.totalorder %s3646_s1, %s3646_s1 }
  0x80   : > { %p3649_p2 = pnand %p3647_p0, %p3937_p8  ;;  %p3656_p4 = por %p3655_p9, %p3654_p7 }
  0x82   : > { %p3650_p5 = pneg %p3649_p2 }
  0x84   : > { %p3657_p10 = pnand %p3656_p4, %p3650_p5 }
  0x86   : > { %3660 = shalt.err (!%p3657_p10)
}
  0x87   : > { %3319 = dma.hbm_to_vmem [thread:$0]  (!%p3921_p6), %s4672_s7, 1024, %s402_s19, [#allocation9], %s4702_s6, %s4702_s6, %s4701_s10  }
  0x88   : > { %s3808_s24 = smov [#allocation13]   ;;  %s3661_s8 = scalar_lea.hbm %s4676_s11, 2048 }
  0x89   : > { %s433_s17 = sshll.u32 %s3808_s24, 4  ;;  %p3662_p1 = scmp.ne.s32.totalorder %s4676_s11, %s3661_s8  ;;  %s434_s17 = int_to_ptr.vmem [resolvable:$true] %s433_s17 }
  0x8a   : > { %p3668_p12 = scmp.lt.u32.totalorder %s3661_s8, %s4676_s11 }
  0x8b   : > { %p3664_p3 = pnand %p3662_p1, %p3937_p8 }
  0x8d   : > { %p3665_p11 = pneg %p3664_p3 }
  0x8f   : > { %p3670_p13 = pnand %p3668_p12, %p3665_p11 }
  0x91   : > { %3673 = shalt.err (!%p3670_p13)
}
  0x92   : > { %s3674_s19 = scalar_lea.vmem %s434_s17, 2048  ;;  %p3682_p7 = scmp.lt.s32.totalorder %s434_s17, %s434_s17 }
  0x93   : > { %p3675_p0 = scmp.ne.s32.totalorder %s434_s17, %s3674_s19  ;;  %p3683_p9 = scmp.lt.s32.totalorder %s3674_s19, %s3674_s19 }
  0x95   : > { %p3677_p2 = pnand %p3675_p0, %p3937_p8  ;;  %p3684_p4 = por %p3683_p9, %p3682_p7 }
  0x97   : > { %p3678_p5 = pneg %p3677_p2 }
  0x99   : > { %p3685_p10 = pnand %p3684_p4, %p3678_p5 }
  0x9b   : > { %3688 = shalt.err (!%p3685_p10)
}
  0x9c   : > { %3325 = dma.hbm_to_vmem [thread:$0]  (!%p3921_p6), %s4676_s11, 2048, %s434_s17, [#allocation12], %s4702_s6, %s4702_s6, %s4701_s10  }
  0x9d   : > { %s2799_s13 = sadd.s32 4294967294, %s3797_s28   ;;  %s4074_s16 = sadd.s32 1, %s3797_s28  }
  0x9e   : > { %s36_s12 = ssub.s32 %s3797_s28, %s4074_s16  ;;  %s39_s24 = sadd.s32 1, %s3793_s27 }
  0x9f   : > { %p37_p8 = scmp.eq.s32.totalorder %s36_s12, 0  ;;  %p46_p1 = scmp.ne.s32.totalorder %s3793_s27, %s3789_s26 }
  0xa0   : > { %p47_p3 = scmp.eq.s32.totalorder %s3797_s28, 0  ;;  %p52_p11 = scmp.ne.s32.totalorder %s3789_s26, %s3785_s25 }
  0xa1   : > { %s4085_s21 = scalar_select %p37_p8, %s3793_s27, %s39_s24  }
  0xa2   : > { %p4087_p12 = por %p47_p3, %p46_p1  ;;  %p4704_p13 = scmp.eq.s32.totalorder %s3905_s14, 0 }
  0xa3   : > { %p328_p0 = scmp.eq.s32.totalorder %s3905_s14, 1  ;;  %p334_p2 = scmp.eq.s32.totalorder %s2799_s13, 1 }
  0xa4   : > { %p4093_p6 = por %p4704_p13, %p52_p11  ;;  %p3340_p5 = scmp.lt.s32.totalorder %s3797_s28, 2 }
  0xa5   : > { %s450_s6 = sand.u32 1, %s3793_s27   ;;  %p4100_p7 = por %p328_p0, %p46_p1 }
  0xa6   : > { %p4104_p9 = por %p334_p2, %p52_p11  ;;  %s2808_s22 = sshll.u32 %s450_s6, 8 }
  0xa7   : > { %s4706_s17 = scalar_select %p4100_p7, 1, 0 }
  0xa8   : > { %s4707_s8 = scalar_select %p4104_p9, 1, 0 }
  0xa9   : > { %s2909_s20 = sshll.u32 %s3797_s28, 12  ;;  %s454_s29 = scalar_lea.vmem [#allocation2], %s2808_s22 }
  0xaa   : > { %s4112_s23 = scalar_lea.hbm %s4665_s0, %s2909_s20  ;;  %s461_s13 = sshll.u32 %s454_s29, 4  ;;  %s4114_s13 = int_to_ptr.vmem [resolvable:$true] %s461_s13 }
  0xab   : > { %p4118_p4 = pnand %p3340_p5, %p4087_p12  ;;  %s4122_s24 = scalar_lea.sflag [#allocation3], %s450_s6 }
  0xac   : > { %s3689_s1 = scalar_lea.hbm %s4112_s23, 4096  ;;  %s3694_s30 = scalar_lea.hbm %s4665_s0, 8192 }
  0xad   : > { %p3690_p10 = scmp.ne.s32.totalorder %s4112_s23, %s3689_s1  ;;  %p3691_p8 = pneg %p4118_p4 }
  0xae   : > { %p3695_p11 = scmp.lt.u32.totalorder %s4112_s23, %s4665_s0  ;;  %p3696_p12 = scmp.lt.u32.totalorder %s3694_s30, %s3689_s1 }
  0xaf   : > { %p3692_p1 = pnand %p3691_p8, %p3690_p10  ;;  %p3698_p0 = scmp.lt.u32.totalorder %s3689_s1, %s4112_s23 }
  0xb0   : > { %p3697_p13 = por %p3696_p12, %p3695_p11 }
  0xb1   : > { %p3693_p3 = pneg %p3692_p1 }
  0xb2   : > { %p3699_p2 = por %p3698_p0, %p3697_p13 }
  0xb4   : > { %p3700_p5 = pnand %p3699_p2, %p3693_p3 }
  0xb6   : > { %3703 = shalt.err (!%p3700_p5)
}
  0xb7   : > { %s3704_s6 = scalar_lea.vmem %s4114_s13, 4096  ;;  %s3809_s22 = smov [#allocation2]  }
  0xb8   : > { %p3705_p10 = scmp.ne.s32.totalorder %s4114_s13, %s3704_s6  ;;  %s3709_s20 = sshll.u32 %s3809_s22, 4  ;;  %s3710_s20 = int_to_ptr.vmem [resolvable:$false] %s3709_s20 }
  0xb9   : > { %s3711_s19 = scalar_lea.vmem %s3710_s20, 8192  ;;  %p3712_p7 = scmp.lt.s32.totalorder %s4114_s13, %s3710_s20 }
  0xba   : > { %p3707_p1 = pnand %p3705_p10, %p3691_p8  ;;  %p3713_p11 = scmp.lt.s32.totalorder %s3711_s19, %s3704_s6 }
  0xbc   : > { %p3708_p9 = pneg %p3707_p1  ;;  %p3714_p12 = por %p3713_p11, %p3712_p7 }
  0xbe   : > { %p3715_p13 = pnand %p3714_p12, %p3708_p9 }
  0xc0   : > { %3718 = shalt.err (!%p3715_p13)
}
  0xc1   : > { %s4709_s1 = smov 8   ;;  %p4710_p8 = scmp.ne.s32.totalorder %s4696_s15, 0 }
  0xc2   : > { %3329 = dma.hbm_to_vmem [thread:$0]  (!%p4118_p4), %s4112_s23, 4096, %s4114_s13, %s4122_s24, %s4700_s18, %s4700_s18, %s4709_s1  }
  0xc3   : > { %473 = sbr.rel (%p4710_p8) target bundleno = 1720 (0x6b8), region = 72  ;;  %s4156_s30 = sand.u32 (!%p4710_p8), 1, %s3789_s26  }
  0xc4   : > { %s2812_s29 = sshll.u32 (!%p4710_p8), %s4156_s30, 8  ;;  %s476_s6 = scalar_lea.sflag (!%p4710_p8), [#allocation3], %s4156_s30 }
  0xc5   : > { %s4162_s12 = scalar_lea.vmem (!%p4710_p8), [#allocation2], %s2812_s29 }
  0xca   : > { %3764 = dma.done.wait (%p4093_p6), %s476_s6, 4096  }
  0xcb   : > { %3766 = vsyncadd (%p4093_p6), %s476_s6, 4294963200  ;;  %p4711_p7 = scmp.eq.s32.totalorder %s3905_s14, 0 }
  0xcd   : > { %3768 = dma.done.wait (%p4711_p7), [#allocation6], 4096   ;;  %p4712_p9 = pmov %p4711_p7 }
  0xce   : > { %p4713_p4 = pmov %p4711_p7 }
  0xcf   : > { %3770 = vsyncadd (%p4712_p9), [#allocation6], 4294963200 }
  0xd0   : > { %3772 = dma.done.wait (%p4713_p4), [#allocation9], 2048   ;;  %p4714_p3 = pmov %p4713_p4 }
  0xd2   : > { %3774 = vsyncadd (%p4714_p3), [#allocation9], 4294965248  ;;  %p4715_p0 = pmov %p4714_p3 }
  0xd4   : > { %3776 = dma.done.wait (%p4715_p0), [#allocation12], 4096   ;;  %p4716_p2 = pmov %p4715_p0 }
  0xd5   : > { %v3810_v0 = vmov 0   ;;  %v3393_v1 = vld [vmem:[#allocation5 + $0x4] ss:$8 sps:$4 sm:$0xff]   ;;  %v3395_v2 = vld [vmem:[#allocation5] ss:$8 sps:$4 sm:$0xff]   ;;  %v3421_v24 = vld [vmem:[#allocation7 + $0x50] sm:$0xff]  }
  0xd6   : > { %3778 = vsyncadd (%p4716_p2), [#allocation12], 4294963200  ;;  %737 = vmatprep.mubr.bf16.mxu0 %v3810_v0  ;;  %705 = vmatprep.subr.bf16.mxu0 %v3393_v1  ;;  %v3396_v3 = vld [vmem:[#allocation5 + $0x14] ss:$8 sps:$4 sm:$0xff]   ;;  %v3398_v4 = vld [vmem:[#allocation5 + $0x10] ss:$8 sps:$4 sm:$0xff]  }
  0xd7   : > { %706 = vmatpush1.bf16.msra.mxu0 %v3395_v2  ;;  %v3399_v5 = vld [vmem:[#allocation5 + $0x24] ss:$8 sps:$4 sm:$0xff]   ;;  %v3401_v6 = vld [vmem:[#allocation5 + $0x20] ss:$8 sps:$4 sm:$0xff]   ;;  %v3402_v7 = vld [vmem:[#allocation5 + $0x34] ss:$8 sps:$4 sm:$0xff]  }
  0xd8   : > { %707 = vmatprep.subr.bf16.mxu0 %v3396_v3  ;;  %v3404_v8 = vld [vmem:[#allocation5 + $0x30] ss:$8 sps:$4 sm:$0xff]   ;;  %v3405_v9 = vld [vmem:[#allocation5 + $0x44] ss:$8 sps:$4 sm:$0xff]   ;;  %v3407_v10 = vld [vmem:[#allocation5 + $0x40] ss:$8 sps:$4 sm:$0xff]  }
  0xd9   : > { %v3408_v11 = vld [vmem:[#allocation5 + $0x54] ss:$8 sps:$4 sm:$0xff]   ;;  %v3410_v12 = vld [vmem:[#allocation5 + $0x50] ss:$8 sps:$4 sm:$0xff]   ;;  %v3411_v13 = vld [vmem:[#allocation5 + $0x64] ss:$8 sps:$4 sm:$0xff]  }
  0xda   : > { %v3413_v14 = vld [vmem:[#allocation5 + $0x60] ss:$8 sps:$4 sm:$0xff]   ;;  %v3414_v15 = vld [vmem:[#allocation5 + $0x74] ss:$8 sps:$4 sm:$0xff]   ;;  %v3416_v19 = vld [vmem:[#allocation5 + $0x70] ss:$8 sps:$4 sm:$0xff]  }
  0xdb   : > { %708 = vmatpush1.bf16.msra.mxu0 %v3398_v4  ;;  %v3417_v16 = vld [vmem:[#allocation7 + $0x40] sm:$0xff]   ;;  %v3419_v18 = vld [vmem:[#allocation7 + $0x48] sm:$0xff]   ;;  %v3422_v25 = vld [vmem:[#allocation7 + $0x10] sm:$0xff]   ;;  %s4717_s22 = sld [smem:[#allocation21_spill]]  ;;  %s4718_s1 = sld [smem:[#allocation22_spill]] }
  0xdc   : > { %709 = vmatprep.subr.bf16.mxu0 %v3399_v5  ;;  %v3418_v17 = vld [vmem:[#allocation7] sm:$0xff]   ;;  %v550_v21 = vld [vmem:[%s4162_s12 + $0x8] sm:$0xff]  ;;  %2911 = vmatprep.subr.bf16.mxu1 %v3417_v16  ;;  %v3423_v26 = vld [vmem:[#allocation7 + $0x58] sm:$0xff]   ;;  %s4719_s18 = sld [smem:[#allocation23_spill]]  ;;  %s4720_s13 = sld [smem:[#allocation24_spill]] }
  0xdd   : > { %v549_v20 = vld [vmem:[%s4162_s12] sm:$0xff]  ;;  %2912 = vmatpush3.bf16.msra.mxu1 %v3418_v17  ;;  %v3420_v22 = vld [vmem:[#allocation7 + $0x8] sm:$0xff]   ;;  %v551_v27 = vld [vmem:[%s4162_s12 + $0x10] sm:$0xff]  ;;  %s4519_s24 = scalar_lea.vmem [#allocation14], %s2812_s29  ;;  %s2910_s29 = sshll.u32 %s3905_s14, 12 }
  0xde   : > { %v581_v23 = vpack.c.bf16 %v550_v21, %v549_v20  ;;  %2913 = vmatprep.subr.bf16.mxu1 %v3419_v18  ;;  %v552_v28 = vld [vmem:[%s4162_s12 + $0x18] sm:$0xff]  ;;  %v3425_v30 = vld [vmem:[#allocation7 + $0x60] sm:$0xff]   ;;  %v3427_v33 = vld [vmem:[#allocation7 + $0x68] sm:$0xff]   ;;  %v615_v18 = vlaneseq  ;;  %s2656_s14 = scalar_lea.sflag [#allocation4], %s4156_s30  ;;  %p4722_p5 = scmp.ne.s32.totalorder %s4706_s17, 0 }
  0xdf   : > { %710 = vmatpush1.bf16.msra.mxu0 %v3401_v6  ;;  %v3424_v29 = vld [vmem:[#allocation7 + $0x18] sm:$0xff]   ;;  %v582_v31 = vpack.c.bf16 %v552_v28, %v551_v27  ;;  %v3426_v32 = vld [vmem:[#allocation7 + $0x20] sm:$0xff]   ;;  %v554_v35 = vld [vmem:[%s4162_s12 + $0x28] sm:$0xff] }
  0xe0   : > { %711 = vmatprep.subr.bf16.mxu0 %v3402_v7  ;;  %v553_v34 = vld [vmem:[%s4162_s12 + $0x20] sm:$0xff]  ;;  %v555_v37 = vld [vmem:[%s4162_s12 + $0x30] sm:$0xff]  ;;  %v556_v38 = vld [vmem:[%s4162_s12 + $0x38] sm:$0xff]  ;;  %v4228_v20 = vshrl.u32 %v615_v18, 7 }
  0xe1   : > { %2914 = vmatpush3.bf16.msra.mxu1 %v3420_v22  ;;  %v583_v36 = vpack.c.bf16 %v554_v35, %v553_v34  ;;  %v584_v39 = vpack.c.bf16 %v556_v38, %v555_v37  ;;  %v557_v40 = vld [vmem:[%s4162_s12 + $0x40] sm:$0xff]  ;;  %v558_v41 = vld [vmem:[%s4162_s12 + $0x48] sm:$0xff]  ;;  %v559_v43 = vld [vmem:[%s4162_s12 + $0x50] sm:$0xff] }
  0xe2   : > { %2915 = vmatprep.subr.bf16.mxu1 %v3421_v24  ;;  %v585_v42 = vpack.c.bf16 %v558_v41, %v557_v40  ;;  %v560_v44 = vld [vmem:[%s4162_s12 + $0x58] sm:$0xff]  ;;  %v561_v46 = vld [vmem:[%s4162_s12 + $0x60] sm:$0xff]  ;;  %v562_v47 = vld [vmem:[%s4162_s12 + $0x68] sm:$0xff]  ;;  %v617_v21 = vsub.s32 0, %v4228_v20 }
  0xe3   : > { %712 = vmatpush1.bf16.msra.mxu0 %v3404_v8  ;;  %v586_v45 = vpack.c.bf16 %v560_v44, %v559_v43  ;;  %v587_v48 = vpack.c.bf16 %v562_v47, %v561_v46  ;;  %v563_v49 = vld [vmem:[%s4162_s12 + $0x70] sm:$0xff]  ;;  %v564_v50 = vld [vmem:[%s4162_s12 + $0x78] sm:$0xff]  ;;  %v565_v52 = vld [vmem:[%s4162_s12 + $0x80] sm:$0xff] }
  0xe4   : > { %713 = vmatprep.subr.bf16.mxu0 %v3405_v9  ;;  %v588_v51 = vpack.c.bf16 %v564_v50, %v563_v49  ;;  %v566_v53 = vld [vmem:[%s4162_s12 + $0x88] sm:$0xff]  ;;  %v567_v55 = vld [vmem:[%s4162_s12 + $0x90] sm:$0xff]  ;;  %v568_v56 = vld [vmem:[%s4162_s12 + $0x98] sm:$0xff] }
  0xe5   : > { %2916 = vmatpush3.bf16.msra.mxu1 %v3422_v25  ;;  %v589_v54 = vpack.c.bf16 %v566_v53, %v565_v52  ;;  %v590_v57 = vpack.c.bf16 %v568_v56, %v567_v55  ;;  %v569_v58 = vld [vmem:[%s4162_s12 + $0xa0] sm:$0xff]  ;;  %v570_v59 = vld [vmem:[%s4162_s12 + $0xa8] sm:$0xff]  ;;  %v571_v61 = vld [vmem:[%s4162_s12 + $0xb0] sm:$0xff] }
  0xe6   : > { %2917 = vmatprep.subr.bf16.mxu1 %v3423_v26  ;;  %v591_v60 = vpack.c.bf16 %v570_v59, %v569_v58  ;;  %v572_v62 = vld [vmem:[%s4162_s12 + $0xb8] sm:$0xff]  ;;  %v3428_v63 = vld [vmem:[#allocation7 + $0x28] sm:$0xff]   ;;  %v3429_v2 = vld [vmem:[#allocation7 + $0x70] sm:$0xff]  }
  0xe7   : > { %714 = vmatpush1.bf16.msra.mxu0 %v3407_v10  ;;  %v592_v1 = vpack.c.bf16 %v572_v62, %v571_v61  ;;  %v3430_v3 = vld [vmem:[#allocation7 + $0x30] sm:$0xff]   ;;  %v3431_v4 = vld [vmem:[#allocation7 + $0x78] sm:$0xff]   ;;  %v573_v5 = vld [vmem:[%s4162_s12 + $0xc0] sm:$0xff] }
  0xe8   : > { %715 = vmatprep.subr.bf16.mxu0 %v3408_v11  ;;  %v574_v6 = vld [vmem:[%s4162_s12 + $0xc8] sm:$0xff]  ;;  %v3432_v7 = vld [vmem:[#allocation7 + $0x38] sm:$0xff]   ;;  %v575_v9 = vld [vmem:[%s4162_s12 + $0xd0] sm:$0xff] }
  0xe9   : > { %2918 = vmatpush3.bf16.msra.mxu1 %v3424_v29  ;;  %v593_v8 = vpack.c.bf16 %v574_v6, %v573_v5  ;;  %v576_v10 = vld [vmem:[%s4162_s12 + $0xd8] sm:$0xff]  ;;  %v613_v22 = vld [vmem:[%s4667_s2] sm:$0x3]  ;;  %v3434_v27 = vld [vmem:[#allocation8 + $0x8] sm:$0xff]  }
  0xea   : > { %2919 = vmatprep.subr.bf16.mxu1 %v3425_v30  ;;  %v594_v11 = vpack.c.bf16 %v576_v10, %v575_v9  ;;  %v580_v16 = vld [vmem:[%s4162_s12 + $0xf8] sm:$0xff]  ;;  %v4237_v24 = vrot.slane %v613_v22, %v617_v21  ;;  %v3435_v34 = vld [vmem:[#allocation8 + $0x10] sm:$0xff]   ;;  %v3437_v44 = vld [vmem:[#allocation8 + $0x20] sm:$0xff]  }
  0xeb   : > { %716 = vmatpush1.bf16.msra.mxu0 %v3410_v12  ;;  %v577_v12 = vld [vmem:[%s4162_s12 + $0xe0] sm:$0xff]  ;;  %v3438_v52 = vld [vmem:[#allocation8 + $0x28] sm:$0xff]  }
  0xec   : > { %717 = vmatprep.subr.bf16.mxu0 %v3411_v13  ;;  %v578_v13 = vld [vmem:[%s4162_s12 + $0xe8] sm:$0xff] }
  0xed   : > { %2920 = vmatpush3.bf16.msra.mxu1 %v3426_v32 }
  0xee   : > { %2921 = vmatprep.subr.bf16.mxu1 %v3427_v33 }
  0xef   : > { %718 = vmatpush1.bf16.msra.mxu0 %v3413_v14  ;;  %v595_v14 = vpack.c.bf16 %v578_v13, %v577_v12 }
  0xf0   : > { %719 = vmatprep.subr.bf16.mxu0 %v3414_v15  ;;  %v579_v15 = vld [vmem:[%s4162_s12 + $0xf0] sm:$0xff] }
  0xf1   : > { %2922 = vmatpush3.bf16.msra.mxu1 %v3428_v63  ;;  %v596_v17 = vpack.c.bf16 %v580_v16, %v579_v15 }
  0xf2   : > { %2923 = vmatprep.subr.bf16.mxu1 %v3429_v2 }
  0xf3   : > { %720 = vmatpush1.bf16.msra.mxu0 %v3416_v19  ;;  %v3433_v19 = vld [vmem:[#allocation8] sm:$0xff]  }
  0xf4   : > { %3183 = vmatprep.subr.bf16.mxu0 %v3433_v19 }
  0xf5   : > { %2924 = vmatpush3.bf16.msra.mxu1 %v3430_v3 }
  0xf6   : > { %738 = vmatmul.mubr.bf16.vlgmr.msra.gmra.mrb[0].mxu0 %v581_v23  ;;  %2925 = vmatprep.subr.bf16.mxu1 %v3431_v4  ;;  %v621_v23 = vsub.s32 1, %v4228_v20 }
  0xf7   : > { %747 = vmatprep.mubr.bf16.mxu0 %v3810_v0  ;;  %3184 = vmatpush3.bf16.msra.mxu0 %v3433_v19 }
  0xf8   : > { %v4241_v25 = vrot.slane %v613_v22, %v621_v23  ;;  %3185 = vmatprep.subr.bf16.mxu0 %v3434_v27 }
  0xf9   : > { %2926 = vmatpush3.bf16.msra.mxu1 %v3432_v7 }
  0xfb   : > { %3186 = vmatpush3.bf16.msra.mxu0 %v3434_v27 }
  0xfc   : > { %3187 = vmatprep.subr.bf16.mxu0 %v3435_v34 }
  0xfe   : > { %748 = vmatmul.mubr.bf16.gmra.mrb[4].mxu0 %v582_v31 }
  0xff   : > { %757 = vmatprep.mubr.bf16.mxu0 %v3810_v0  ;;  %3188 = vmatpush3.bf16.msra.mxu0 %v3435_v34 }
 0x106   : > { %758 = vmatmul.mubr.bf16.gmra.mrb[8].mxu0 %v583_v36  ;;  %v3436_v36 = vld [vmem:[#allocation8 + $0x18] sm:$0xff]  }
 0x107   : > { %767 = vmatprep.mubr.bf16.mxu0 %v3810_v0  ;;  %3189 = vmatprep.subr.bf16.mxu0 %v3436_v36 }
 0x108   : > { %3190 = vmatpush3.bf16.msra.mxu0 %v3436_v36 }
 0x109   : > { %3191 = vmatprep.subr.bf16.mxu0 %v3437_v44 }
 0x10c   : > { %3192 = vmatpush3.bf16.msra.mxu0 %v3437_v44 }
 0x10d   : > { %3193 = vmatprep.subr.bf16.mxu0 %v3438_v52 }
 0x10e   : > { %768 = vmatmul.mubr.bf16.gmra.mrb[12].mxu0 %v584_v39 }
 0x10f   : > { %777 = vmatprep.mubr.bf16.mxu0 %v3810_v0 }
 0x110   : > { %3194 = vmatpush3.bf16.msra.mxu0 %v3438_v52 }
 0x116   : > { %778 = vmatmul.mubr.bf16.gmra.mrb[16].mxu0 %v585_v42 }
 0x117   : > { %787 = vmatprep.mubr.bf16.mxu0 %v3810_v0 }
 0x11e   : > { %788 = vmatmul.mubr.bf16.gmra.mrb[20].mxu0 %v586_v45 }
 0x11f   : > { %797 = vmatprep.mubr.bf16.mxu0 %v3810_v0 }
 0x126   : > { %798 = vmatmul.mubr.bf16.gmra.mrb[24].mxu0 %v587_v48 }
 0x127   : > { %807 = vmatprep.mubr.bf16.mxu0 %v3810_v0 }
 0x12e   : > { %808 = vmatmul.mubr.bf16.gmra.mrb[28].mxu0 %v588_v51 }
 0x12f   : > { %817 = vmatprep.mubr.bf16.mxu0 %v3810_v0 }
 0x136   : > { %818 = vmatmul.mubr.bf16.gmra.mrb[32].mxu0 %v589_v54 }
 0x137   : > { %827 = vmatprep.mubr.bf16.mxu0 %v3810_v0 }
 0x13e   : > { %828 = vmatmul.mubr.bf16.gmra.mrb[36].mxu0 %v590_v57 }
 0x13f   : > { %837 = vmatprep.mubr.bf16.mxu0 %v3810_v0 }
 0x146   : > { %838 = vmatmul.mubr.bf16.gmra.mrb[40].mxu0 %v591_v60  ;;  %v3439_v60 = vld [vmem:[#allocation8 + $0x30] sm:$0xff]  }
 0x147   : > { %847 = vmatprep.mubr.bf16.mxu0 %v3810_v0  ;;  %3195 = vmatprep.subr.bf16.mxu0 %v3439_v60 }
 0x148   : > { %3196 = vmatpush3.bf16.msra.mxu0 %v3439_v60 }
 0x14e   : > { %848 = vmatmul.mubr.bf16.gmra.mrb[44].mxu0 %v592_v1 }
 0x14f   : > { %857 = vmatprep.mubr.bf16.mxu0 %v3810_v0 }
 0x156   : > { %858 = vmatmul.mubr.bf16.gmra.mrb[48].mxu0 %v593_v8 }
 0x157   : > { %867 = vmatprep.mubr.bf16.mxu0 %v3810_v0 }
 0x15e   : > { %868 = vmatmul.mubr.bf16.gmra.mrb[52].mxu0 %v594_v11 }
 0x15f   : > { %877 = vmatprep.mubr.bf16.mxu0 %v3810_v0 }
 0x166   : > { %878 = vmatmul.mubr.bf16.gmra.mrb[56].mxu0 %v595_v14 }
 0x167   : > { %887 = vmatprep.mubr.bf16.mxu0 %v3810_v0 }
 0x16e   : > { %888 = vmatmul.mubr.bf16.gmra.mrb[60].mxu0 %v596_v17 }
 0x1c9   : > { %v739_v26 = vpop.f32.mrb[0].mxu0 }
 0x1ca   : > { %v740_v28 = vadd.f32 %v739_v26, %v4237_v24  ;;  %v741_v29 = vpop.f32.mrb[1].mxu0 }
 0x1cb   : > { %v742_v30 = vadd.f32 %v741_v29, %v4241_v25  ;;  %v743_v31 = vpop.f32.mrb[2].mxu0 }
 0x1cc   : > { %v744_v32 = vadd.f32 %v743_v31, %v4237_v24  ;;  %v745_v33 = vpop.f32.mrb[3].mxu0  ;;  %v898_v37 = vmax.f32 %v740_v28, 0.0 }
 0x1cd   : > { %v746_v35 = vadd.f32 %v745_v33, %v4241_v25  ;;  %v899_v39 = vmax.f32 %v742_v30, 0.0 }
 0x1ce   : > { %v900_v38 = vmax.f32 %v744_v32, 0.0 }
 0x1cf   : > { %v901_v40 = vmax.f32 %v746_v35, 0.0 }
 0x1d0   : > { %v962_v41 = vpack.c.bf16 %v900_v38, %v898_v37 }
 0x1d1   : > { %v749_v42 = vpop.f32.mrb[4].mxu0  ;;  %v963_v43 = vpack.c.bf16 %v901_v40, %v899_v39 }
 0x1d2   : > { %v750_v45 = vadd.f32 %v749_v42, %v4237_v24  ;;  %v751_v46 = vpop.f32.mrb[5].mxu0 }
 0x1d3   : > { %v752_v47 = vadd.f32 %v751_v46, %v4241_v25  ;;  %v753_v48 = vpop.f32.mrb[6].mxu0  ;;  %1161 = vmatprep.mubr.bf16.mxu1 %v963_v43 }
 0x1d4   : > { %v754_v49 = vadd.f32 %v753_v48, %v4237_v24  ;;  %v755_v50 = vpop.f32.mrb[7].mxu0  ;;  %1162 = vmatmul.mubr.bf16.vlgmr.msra.gmra.mrb[0].mxu1 %v962_v41  ;;  %v902_v53 = vmax.f32 %v750_v45, 0.0 }
 0x1d5   : > { %v756_v51 = vadd.f32 %v755_v50, %v4241_v25  ;;  %v903_v55 = vmax.f32 %v752_v47, 0.0 }
 0x1d6   : > { %v904_v54 = vmax.f32 %v754_v49, 0.0 }
 0x1d7   : > { %v905_v56 = vmax.f32 %v756_v51, 0.0 }
 0x1d8   : > { %v964_v57 = vpack.c.bf16 %v904_v54, %v902_v53 }
 0x1d9   : > { %v965_v58 = vpack.c.bf16 %v905_v56, %v903_v55  ;;  %v759_v59 = vpop.f32.mrb[8].mxu0 }
 0x1da   : > { %v760_v61 = vadd.f32 %v759_v59, %v4237_v24  ;;  %v761_v62 = vpop.f32.mrb[9].mxu0 }
 0x1db   : > { %v762_v63 = vadd.f32 %v761_v62, %v4241_v25  ;;  %v763_v1 = vpop.f32.mrb[10].mxu0  ;;  %1169 = vmatprep.mubr.bf16.mxu1 %v965_v58 }
 0x1dc   : > { %v764_v2 = vadd.f32 %v763_v1, %v4237_v24  ;;  %v765_v3 = vpop.f32.mrb[11].mxu0  ;;  %1170 = vmatmul.mubr.bf16.gmra.mrb[4].mxu1 %v964_v57  ;;  %v906_v5 = vmax.f32 %v760_v61, 0.0 }
 0x1dd   : > { %v766_v4 = vadd.f32 %v765_v3, %v4241_v25  ;;  %v907_v7 = vmax.f32 %v762_v63, 0.0 }
 0x1de   : > { %v908_v6 = vmax.f32 %v764_v2, 0.0 }
 0x1df   : > { %v909_v8 = vmax.f32 %v766_v4, 0.0 }
 0x1e0   : > { %v966_v9 = vpack.c.bf16 %v908_v6, %v906_v5 }
 0x1e1   : > { %v967_v10 = vpack.c.bf16 %v909_v8, %v907_v7  ;;  %v769_v11 = vpop.f32.mrb[12].mxu0 }
 0x1e2   : > { %v770_v12 = vadd.f32 %v769_v11, %v4237_v24  ;;  %v771_v13 = vpop.f32.mrb[13].mxu0 }
 0x1e3   : > { %v772_v14 = vadd.f32 %v771_v13, %v4241_v25  ;;  %v773_v15 = vpop.f32.mrb[14].mxu0  ;;  %1177 = vmatprep.mubr.bf16.mxu1 %v967_v10 }
 0x1e4   : > { %v774_v16 = vadd.f32 %v773_v15, %v4237_v24  ;;  %v775_v17 = vpop.f32.mrb[15].mxu0  ;;  %1178 = vmatmul.mubr.bf16.gmra.mrb[8].mxu1 %v966_v9  ;;  %v910_v19 = vmax.f32 %v770_v12, 0.0 }
 0x1e5   : > { %v776_v18 = vadd.f32 %v775_v17, %v4241_v25  ;;  %v911_v26 = vmax.f32 %v772_v14, 0.0 }
 0x1e6   : > { %v912_v22 = vmax.f32 %v774_v16, 0.0 }
 0x1e7   : > { %v913_v27 = vmax.f32 %v776_v18, 0.0 }
 0x1e8   : > { %v968_v28 = vpack.c.bf16 %v912_v22, %v910_v19 }
 0x1e9   : > { %v969_v29 = vpack.c.bf16 %v913_v27, %v911_v26  ;;  %v779_v30 = vpop.f32.mrb[16].mxu0 }
 0x1ea   : > { %v780_v31 = vadd.f32 %v779_v30, %v4237_v24  ;;  %v781_v32 = vpop.f32.mrb[17].mxu0 }
 0x1eb   : > { %v782_v33 = vadd.f32 %v781_v32, %v4241_v25  ;;  %v783_v34 = vpop.f32.mrb[18].mxu0  ;;  %1185 = vmatprep.mubr.bf16.mxu1 %v969_v29 }
 0x1ec   : > { %v784_v35 = vadd.f32 %v783_v34, %v4237_v24  ;;  %v785_v36 = vpop.f32.mrb[19].mxu0  ;;  %1186 = vmatmul.mubr.bf16.gmra.mrb[12].mxu1 %v968_v28  ;;  %v914_v38 = vmax.f32 %v780_v31, 0.0 }
 0x1ed   : > { %v786_v37 = vadd.f32 %v785_v36, %v4241_v25  ;;  %v915_v40 = vmax.f32 %v782_v33, 0.0 }
 0x1ee   : > { %v916_v39 = vmax.f32 %v784_v35, 0.0 }
 0x1ef   : > { %v917_v41 = vmax.f32 %v786_v37, 0.0 }
 0x1f0   : > { %v970_v42 = vpack.c.bf16 %v916_v39, %v914_v38 }
 0x1f1   : > { %v971_v43 = vpack.c.bf16 %v917_v41, %v915_v40  ;;  %v789_v44 = vpop.f32.mrb[20].mxu0 }
 0x1f2   : > { %v790_v45 = vadd.f32 %v789_v44, %v4237_v24  ;;  %v791_v46 = vpop.f32.mrb[21].mxu0 }
 0x1f3   : > { %v792_v47 = vadd.f32 %v791_v46, %v4241_v25  ;;  %v793_v48 = vpop.f32.mrb[22].mxu0  ;;  %1193 = vmatprep.mubr.bf16.mxu1 %v971_v43 }
 0x1f4   : > { %v794_v49 = vadd.f32 %v793_v48, %v4237_v24  ;;  %v795_v50 = vpop.f32.mrb[23].mxu0  ;;  %1194 = vmatmul.mubr.bf16.gmra.mrb[16].mxu1 %v970_v42  ;;  %v918_v52 = vmax.f32 %v790_v45, 0.0 }
 0x1f5   : > { %v796_v51 = vadd.f32 %v795_v50, %v4241_v25  ;;  %v919_v54 = vmax.f32 %v792_v47, 0.0 }
 0x1f6   : > { %v920_v53 = vmax.f32 %v794_v49, 0.0 }
 0x1f7   : > { %v921_v55 = vmax.f32 %v796_v51, 0.0 }
 0x1f8   : > { %v972_v56 = vpack.c.bf16 %v920_v53, %v918_v52 }
 0x1f9   : > { %v973_v57 = vpack.c.bf16 %v921_v55, %v919_v54  ;;  %v799_v58 = vpop.f32.mrb[24].mxu0 }
 0x1fa   : > { %v800_v59 = vadd.f32 %v799_v58, %v4237_v24  ;;  %v801_v60 = vpop.f32.mrb[25].mxu0 }
 0x1fb   : > { %v802_v61 = vadd.f32 %v801_v60, %v4241_v25  ;;  %v803_v62 = vpop.f32.mrb[26].mxu0  ;;  %1201 = vmatprep.mubr.bf16.mxu1 %v973_v57 }
 0x1fc   : > { %v804_v63 = vadd.f32 %v803_v62, %v4237_v24  ;;  %v805_v1 = vpop.f32.mrb[27].mxu0  ;;  %1202 = vmatmul.mubr.bf16.gmra.mrb[20].mxu1 %v972_v56  ;;  %v922_v3 = vmax.f32 %v800_v59, 0.0 }
 0x1fd   : > { %v806_v2 = vadd.f32 %v805_v1, %v4241_v25  ;;  %v923_v5 = vmax.f32 %v802_v61, 0.0 }
 0x1fe   : > { %v924_v4 = vmax.f32 %v804_v63, 0.0 }
 0x1ff   : > { %v925_v6 = vmax.f32 %v806_v2, 0.0 }
 0x200   : > { %v974_v7 = vpack.c.bf16 %v924_v4, %v922_v3 }
 0x201   : > { %v975_v8 = vpack.c.bf16 %v925_v6, %v923_v5  ;;  %v809_v9 = vpop.f32.mrb[28].mxu0 }
 0x202   : > { %v810_v10 = vadd.f32 %v809_v9, %v4237_v24  ;;  %v811_v11 = vpop.f32.mrb[29].mxu0 }
 0x203   : > { %v812_v12 = vadd.f32 %v811_v11, %v4241_v25  ;;  %v813_v13 = vpop.f32.mrb[30].mxu0  ;;  %1209 = vmatprep.mubr.bf16.mxu1 %v975_v8 }
 0x204   : > { %v814_v14 = vadd.f32 %v813_v13, %v4237_v24  ;;  %v815_v15 = vpop.f32.mrb[31].mxu0  ;;  %1210 = vmatmul.mubr.bf16.gmra.mrb[24].mxu1 %v974_v7  ;;  %v926_v17 = vmax.f32 %v810_v10, 0.0 }
 0x205   : > { %v816_v16 = vadd.f32 %v815_v15, %v4241_v25  ;;  %v927_v19 = vmax.f32 %v812_v12, 0.0 }
 0x206   : > { %v928_v18 = vmax.f32 %v814_v14, 0.0 }
 0x207   : > { %v929_v22 = vmax.f32 %v816_v16, 0.0 }
 0x208   : > { %v976_v26 = vpack.c.bf16 %v928_v18, %v926_v17 }
 0x209   : > { %v977_v27 = vpack.c.bf16 %v929_v22, %v927_v19  ;;  %v819_v28 = vpop.f32.mrb[32].mxu0 }
 0x20a   : > { %v820_v29 = vadd.f32 %v819_v28, %v4237_v24  ;;  %v821_v30 = vpop.f32.mrb[33].mxu0 }
 0x20b   : > { %v822_v31 = vadd.f32 %v821_v30, %v4241_v25  ;;  %v823_v32 = vpop.f32.mrb[34].mxu0  ;;  %1217 = vmatprep.mubr.bf16.mxu1 %v977_v27 }
 0x20c   : > { %v824_v33 = vadd.f32 %v823_v32, %v4237_v24  ;;  %v825_v34 = vpop.f32.mrb[35].mxu0  ;;  %1218 = vmatmul.mubr.bf16.gmra.mrb[28].mxu1 %v976_v26  ;;  %v930_v36 = vmax.f32 %v820_v29, 0.0 }
 0x20d   : > { %v826_v35 = vadd.f32 %v825_v34, %v4241_v25  ;;  %v931_v38 = vmax.f32 %v822_v31, 0.0 }
 0x20e   : > { %v932_v37 = vmax.f32 %v824_v33, 0.0 }
 0x20f   : > { %v933_v39 = vmax.f32 %v826_v35, 0.0 }
 0x210   : > { %v978_v40 = vpack.c.bf16 %v932_v37, %v930_v36 }
 0x211   : > { %v979_v41 = vpack.c.bf16 %v933_v39, %v931_v38  ;;  %v829_v42 = vpop.f32.mrb[36].mxu0  ;;  %v3440_v38 = vld [vmem:[#allocation8 + $0x38] sm:$0xff]  }
 0x212   : > { %v830_v43 = vadd.f32 %v829_v42, %v4237_v24  ;;  %v831_v44 = vpop.f32.mrb[37].mxu0  ;;  %3197 = vmatprep.subr.bf16.mxu0 %v3440_v38 }
 0x213   : > { %v832_v45 = vadd.f32 %v831_v44, %v4241_v25  ;;  %v833_v46 = vpop.f32.mrb[38].mxu0  ;;  %1225 = vmatprep.mubr.bf16.mxu1 %v979_v41  ;;  %3198 = vmatpush3.bf16.msra.mxu0 %v3440_v38 }
 0x214   : > { %v834_v47 = vadd.f32 %v833_v46, %v4237_v24  ;;  %v835_v48 = vpop.f32.mrb[39].mxu0  ;;  %1226 = vmatmul.mubr.bf16.gmra.mrb[32].mxu1 %v978_v40  ;;  %v934_v50 = vmax.f32 %v830_v43, 0.0 }
 0x215   : > { %v836_v49 = vadd.f32 %v835_v48, %v4241_v25  ;;  %v935_v52 = vmax.f32 %v832_v45, 0.0 }
 0x216   : > { %v936_v51 = vmax.f32 %v834_v47, 0.0 }
 0x217   : > { %v937_v53 = vmax.f32 %v836_v49, 0.0 }
 0x218   : > { %v980_v54 = vpack.c.bf16 %v936_v51, %v934_v50 }
 0x219   : > { %v981_v55 = vpack.c.bf16 %v937_v53, %v935_v52  ;;  %v839_v56 = vpop.f32.mrb[40].mxu0 }
 0x21a   : > { %v840_v57 = vadd.f32 %v839_v56, %v4237_v24  ;;  %v841_v58 = vpop.f32.mrb[41].mxu0 }
 0x21b   : > { %v842_v59 = vadd.f32 %v841_v58, %v4241_v25  ;;  %v843_v60 = vpop.f32.mrb[42].mxu0  ;;  %1233 = vmatprep.mubr.bf16.mxu1 %v981_v55 }
 0x21c   : > { %v844_v61 = vadd.f32 %v843_v60, %v4237_v24  ;;  %v845_v62 = vpop.f32.mrb[43].mxu0  ;;  %1234 = vmatmul.mubr.bf16.gmra.mrb[36].mxu1 %v980_v54  ;;  %v938_v1 = vmax.f32 %v840_v57, 0.0 }
 0x21d   : > { %v846_v63 = vadd.f32 %v845_v62, %v4241_v25  ;;  %v939_v3 = vmax.f32 %v842_v59, 0.0 }
 0x21e   : > { %v940_v2 = vmax.f32 %v844_v61, 0.0 }
 0x21f   : > { %v941_v4 = vmax.f32 %v846_v63, 0.0 }
 0x220   : > { %v982_v5 = vpack.c.bf16 %v940_v2, %v938_v1 }
 0x221   : > { %v983_v6 = vpack.c.bf16 %v941_v4, %v939_v3  ;;  %v849_v7 = vpop.f32.mrb[44].mxu0 }
 0x222   : > { %v850_v8 = vadd.f32 %v849_v7, %v4237_v24  ;;  %v851_v9 = vpop.f32.mrb[45].mxu0 }
 0x223   : > { %v852_v10 = vadd.f32 %v851_v9, %v4241_v25  ;;  %v853_v11 = vpop.f32.mrb[46].mxu0  ;;  %1241 = vmatprep.mubr.bf16.mxu1 %v983_v6 }
 0x224   : > { %v854_v12 = vadd.f32 %v853_v11, %v4237_v24  ;;  %v855_v13 = vpop.f32.mrb[47].mxu0  ;;  %1242 = vmatmul.mubr.bf16.gmra.mrb[40].mxu1 %v982_v5  ;;  %v942_v15 = vmax.f32 %v850_v8, 0.0 }
 0x225   : > { %v856_v14 = vadd.f32 %v855_v13, %v4241_v25  ;;  %v943_v17 = vmax.f32 %v852_v10, 0.0 }
 0x226   : > { %v944_v16 = vmax.f32 %v854_v12, 0.0 }
 0x227   : > { %v945_v18 = vmax.f32 %v856_v14, 0.0 }
 0x228   : > { %v984_v19 = vpack.c.bf16 %v944_v16, %v942_v15 }
 0x229   : > { %v985_v22 = vpack.c.bf16 %v945_v18, %v943_v17  ;;  %v859_v26 = vpop.f32.mrb[48].mxu0 }
 0x22a   : > { %v860_v27 = vadd.f32 %v859_v26, %v4237_v24  ;;  %v861_v28 = vpop.f32.mrb[49].mxu0 }
 0x22b   : > { %v862_v29 = vadd.f32 %v861_v28, %v4241_v25  ;;  %v863_v30 = vpop.f32.mrb[50].mxu0  ;;  %1249 = vmatprep.mubr.bf16.mxu1 %v985_v22  ;;  %v3441_v22 = vld [vmem:[#allocation10] sm:$0xff]  }
 0x22c   : > { %v864_v31 = vadd.f32 %v863_v30, %v4237_v24  ;;  %v865_v32 = vpop.f32.mrb[51].mxu0  ;;  %1250 = vmatmul.mubr.bf16.gmra.mrb[44].mxu1 %v984_v19  ;;  %v946_v34 = vmax.f32 %v860_v27, 0.0  ;;  %3231 = vmatprep.subr.bf16.mxu1 %v3441_v22  ;;  %v3442_v27 = vld [vmem:[#allocation10 + $0x8] sm:$0xff]  }
 0x22d   : > { %v866_v33 = vadd.f32 %v865_v32, %v4241_v25  ;;  %v947_v36 = vmax.f32 %v862_v29, 0.0  ;;  %3232 = vmatpush3.bf16.msra.mxu1 %v3441_v22 }
 0x22e   : > { %v948_v35 = vmax.f32 %v864_v31, 0.0  ;;  %3233 = vmatprep.subr.bf16.mxu1 %v3442_v27 }
 0x22f   : > { %v949_v37 = vmax.f32 %v866_v33, 0.0  ;;  %v3443_v33 = vld [vmem:[#allocation10 + $0x10] sm:$0xff]  }
 0x230   : > { %v986_v39 = vpack.c.bf16 %v948_v35, %v946_v34  ;;  %v3444_v34 = vld [vmem:[#allocation10 + $0x18] sm:$0xff]  }
 0x231   : > { %v987_v40 = vpack.c.bf16 %v949_v37, %v947_v36  ;;  %v869_v41 = vpop.f32.mrb[52].mxu0  ;;  %3234 = vmatpush3.bf16.msra.mxu1 %v3442_v27 }
 0x232   : > { %v870_v42 = vadd.f32 %v869_v41, %v4237_v24  ;;  %v871_v43 = vpop.f32.mrb[53].mxu0  ;;  %3235 = vmatprep.subr.bf16.mxu1 %v3443_v33 }
 0x233   : > { %v872_v44 = vadd.f32 %v871_v43, %v4241_v25  ;;  %v873_v45 = vpop.f32.mrb[54].mxu0  ;;  %1257 = vmatprep.mubr.bf16.mxu1 %v987_v40 }
 0x234   : > { %v874_v46 = vadd.f32 %v873_v45, %v4237_v24  ;;  %v875_v47 = vpop.f32.mrb[55].mxu0  ;;  %1258 = vmatmul.mubr.bf16.gmra.mrb[48].mxu1 %v986_v39  ;;  %v950_v49 = vmax.f32 %v870_v42, 0.0  ;;  %v3445_v39 = vld [vmem:[#allocation10 + $0x20] sm:$0xff]  }
 0x235   : > { %v876_v48 = vadd.f32 %v875_v47, %v4241_v25  ;;  %v951_v51 = vmax.f32 %v872_v44, 0.0  ;;  %3236 = vmatpush3.bf16.msra.mxu1 %v3443_v33  ;;  %v3446_v47 = vld [vmem:[#allocation10 + $0x28] sm:$0xff]  }
 0x236   : > { %v952_v50 = vmax.f32 %v874_v46, 0.0  ;;  %3237 = vmatprep.subr.bf16.mxu1 %v3444_v34 }
 0x237   : > { %v953_v52 = vmax.f32 %v876_v48, 0.0 }
 0x238   : > { %v988_v53 = vpack.c.bf16 %v952_v50, %v950_v49 }
 0x239   : > { %v989_v54 = vpack.c.bf16 %v953_v52, %v951_v51  ;;  %v879_v55 = vpop.f32.mrb[56].mxu0  ;;  %3238 = vmatpush3.bf16.msra.mxu1 %v3444_v34  ;;  %v3447_v52 = vld [vmem:[#allocation10 + $0x30] sm:$0xff]  }
 0x23a   : > { %v880_v56 = vadd.f32 %v879_v55, %v4237_v24  ;;  %v881_v57 = vpop.f32.mrb[57].mxu0  ;;  %3239 = vmatprep.subr.bf16.mxu1 %v3445_v39 }
 0x23b   : > { %v882_v58 = vadd.f32 %v881_v57, %v4241_v25  ;;  %v883_v59 = vpop.f32.mrb[58].mxu0  ;;  %1265 = vmatprep.mubr.bf16.mxu1 %v989_v54 }
 0x23c   : > { %v884_v60 = vadd.f32 %v883_v59, %v4237_v24  ;;  %v885_v61 = vpop.f32.mrb[59].mxu0  ;;  %1266 = vmatmul.mubr.bf16.gmra.mrb[52].mxu1 %v988_v53  ;;  %v954_v63 = vmax.f32 %v880_v56, 0.0 }
 0x23d   : > { %v886_v62 = vadd.f32 %v885_v61, %v4241_v25  ;;  %v955_v2 = vmax.f32 %v882_v58, 0.0  ;;  %3240 = vmatpush3.bf16.msra.mxu1 %v3445_v39 }
 0x23e   : > { %v956_v1 = vmax.f32 %v884_v60, 0.0  ;;  %3241 = vmatprep.subr.bf16.mxu1 %v3446_v47  ;;  %v3448_v60 = vld [vmem:[#allocation10 + $0x38] sm:$0xff]  }
 0x23f   : > { %v957_v3 = vmax.f32 %v886_v62, 0.0 }
 0x240   : > { %v990_v4 = vpack.c.bf16 %v956_v1, %v954_v63 }
 0x241   : > { %v991_v5 = vpack.c.bf16 %v957_v3, %v955_v2  ;;  %v889_v6 = vpop.f32.mrb[60].mxu0  ;;  %3242 = vmatpush3.bf16.msra.mxu1 %v3446_v47 }
 0x242   : > { %v890_v7 = vadd.f32 %v889_v6, %v4237_v24  ;;  %v891_v8 = vpop.f32.mrb[61].mxu0  ;;  %3243 = vmatprep.subr.bf16.mxu1 %v3447_v52 }
 0x243   : > { %v892_v9 = vadd.f32 %v891_v8, %v4241_v25  ;;  %v893_v10 = vpop.f32.mrb[62].mxu0  ;;  %1273 = vmatprep.mubr.bf16.mxu1 %v991_v5 }
 0x244   : > { %v894_v11 = vadd.f32 %v893_v10, %v4237_v24  ;;  %v895_v12 = vpop.f32.mrb[63].mxu0  ;;  %1274 = vmatmul.mubr.bf16.gmra.mrb[56].mxu1 %v990_v4  ;;  %v958_v14 = vmax.f32 %v890_v7, 0.0  ;;  %v4310_v24 = vld [vmem:[%s4669_s4] ss:$0 sm:$0xff] }
 0x245   : > { %v896_v13 = vadd.f32 %v895_v12, %v4241_v25  ;;  %v959_v16 = vmax.f32 %v892_v9, 0.0  ;;  %3244 = vmatpush3.bf16.msra.mxu1 %v3447_v52 }
 0x246   : > { %v960_v15 = vmax.f32 %v894_v11, 0.0  ;;  %3245 = vmatprep.subr.bf16.mxu1 %v3448_v60 }
 0x247   : > { %v961_v17 = vmax.f32 %v896_v13, 0.0 }
 0x248   : > { %v992_v18 = vpack.c.bf16 %v960_v15, %v958_v14 }
 0x249   : > { %v993_v19 = vpack.c.bf16 %v961_v17, %v959_v16  ;;  %3246 = vmatpush3.bf16.msra.mxu1 %v3448_v60 }
 0x24b   : > { %1281 = vmatprep.mubr.bf16.mxu1 %v993_v19 }
 0x24c   : > { %1282 = vmatmul.mubr.bf16.gmra.mrb[60].mxu1 %v992_v18 }
 0x2a7   : > { %v2927_v26 = vpop.f32.mrb[0].mxu1 }
 0x2a8   : > { %v2928_v28 = vpop.f32.mrb[1].mxu1 }
 0x2a9   : > { %v2929_v25 = vadd.f32 %v2928_v28, %v2927_v26  ;;  %v2930_v29 = vpop.f32.mrb[2].mxu1 }
 0x2aa   : > { %v2931_v30 = vpop.f32.mrb[3].mxu1 }
 0x2ab   : > { %v1164_v31 = vadd.f32 %v2929_v25, %v4310_v24  ;;  %v2932_v32 = vadd.f32 %v2931_v30, %v2930_v29 }
 0x2ad   : > { %v1167_v35 = vadd.f32 %v2932_v32, %v4310_v24  ;;  %v1290_v36 = vmax.f32 %v1164_v31, 0.0 }
 0x2af   : > { %v1291_v37 = vmax.f32 %v1167_v35, 0.0  ;;  %v2933_v38 = vpop.f32.mrb[4].mxu1 }
 0x2b0   : > { %v2934_v40 = vpop.f32.mrb[5].mxu1 }
 0x2b1   : > { %v2935_v41 = vadd.f32 %v2934_v40, %v2933_v38  ;;  %v2936_v42 = vpop.f32.mrb[6].mxu1  ;;  %v1322_v43 = vpack.c.bf16 %v1291_v37, %v1290_v36 }
 0x2b2   : > { %v2937_v44 = vpop.f32.mrb[7].mxu1 }
 0x2b3   : > { %v1172_v45 = vadd.f32 %v2935_v41, %v4310_v24  ;;  %v2938_v46 = vadd.f32 %v2937_v44, %v2936_v42  ;;  %3199 = vmatprep.mubr.bf16.mxu0 %v1322_v43 }
 0x2b5   : > { %v1175_v48 = vadd.f32 %v2938_v46, %v4310_v24  ;;  %v1292_v49 = vmax.f32 %v1172_v45, 0.0 }
 0x2b7   : > { %v1293_v50 = vmax.f32 %v1175_v48, 0.0  ;;  %v2939_v51 = vpop.f32.mrb[8].mxu1 }
 0x2b8   : > { %v2940_v53 = vpop.f32.mrb[9].mxu1 }
 0x2b9   : > { %v1323_v54 = vpack.c.bf16 %v1293_v50, %v1292_v49  ;;  %v2941_v55 = vadd.f32 %v2940_v53, %v2939_v51  ;;  %v2942_v56 = vpop.f32.mrb[10].mxu1 }
 0x2ba   : > { %v2943_v57 = vpop.f32.mrb[11].mxu1 }
 0x2bb   : > { %v1180_v58 = vadd.f32 %v2941_v55, %v4310_v24  ;;  %v2944_v59 = vadd.f32 %v2943_v57, %v2942_v56  ;;  %3200 = vmatmul.mubr.bf16.vlgmr.msra.gmra.mrb[64].mxu0 %v1323_v54 }
 0x2bd   : > { %v1183_v61 = vadd.f32 %v2944_v59, %v4310_v24  ;;  %v1294_v62 = vmax.f32 %v1180_v58, 0.0 }
 0x2bf   : > { %v1295_v63 = vmax.f32 %v1183_v61, 0.0  ;;  %v2945_v1 = vpop.f32.mrb[12].mxu1 }
 0x2c0   : > { %v2946_v2 = vpop.f32.mrb[13].mxu1 }
 0x2c1   : > { %v2947_v3 = vadd.f32 %v2946_v2, %v2945_v1  ;;  %v2948_v4 = vpop.f32.mrb[14].mxu1  ;;  %v1324_v5 = vpack.c.bf16 %v1295_v63, %v1294_v62 }
 0x2c2   : > { %v2949_v6 = vpop.f32.mrb[15].mxu1 }
 0x2c3   : > { %v1188_v7 = vadd.f32 %v2947_v3, %v4310_v24  ;;  %v2950_v8 = vadd.f32 %v2949_v6, %v2948_v4  ;;  %3203 = vmatprep.mubr.bf16.mxu0 %v1324_v5 }
 0x2c5   : > { %v1191_v9 = vadd.f32 %v2950_v8, %v4310_v24  ;;  %v1296_v10 = vmax.f32 %v1188_v7, 0.0 }
 0x2c7   : > { %v1297_v11 = vmax.f32 %v1191_v9, 0.0  ;;  %v2951_v12 = vpop.f32.mrb[16].mxu1 }
 0x2c8   : > { %v2952_v13 = vpop.f32.mrb[17].mxu1 }
 0x2c9   : > { %v2953_v14 = vadd.f32 %v2952_v13, %v2951_v12  ;;  %v2954_v15 = vpop.f32.mrb[18].mxu1  ;;  %v1325_v16 = vpack.c.bf16 %v1297_v11, %v1296_v10 }
 0x2ca   : > { %v2955_v17 = vpop.f32.mrb[19].mxu1 }
 0x2cb   : > { %v1196_v18 = vadd.f32 %v2953_v14, %v4310_v24  ;;  %v2956_v19 = vadd.f32 %v2955_v17, %v2954_v15  ;;  %3204 = vmatmul.mubr.bf16.gmra.mrb[68].mxu0 %v1325_v16 }
 0x2cd   : > { %v1199_v22 = vadd.f32 %v2956_v19, %v4310_v24  ;;  %v1298_v26 = vmax.f32 %v1196_v18, 0.0 }
 0x2cf   : > { %v1299_v27 = vmax.f32 %v1199_v22, 0.0  ;;  %v2957_v28 = vpop.f32.mrb[20].mxu1 }
 0x2d0   : > { %v2958_v25 = vpop.f32.mrb[21].mxu1 }
 0x2d1   : > { %v2959_v29 = vadd.f32 %v2958_v25, %v2957_v28  ;;  %v2960_v30 = vpop.f32.mrb[22].mxu1  ;;  %v1326_v31 = vpack.c.bf16 %v1299_v27, %v1298_v26 }
 0x2d2   : > { %v2961_v32 = vpop.f32.mrb[23].mxu1 }
 0x2d3   : > { %v1204_v33 = vadd.f32 %v2959_v29, %v4310_v24  ;;  %v2962_v34 = vadd.f32 %v2961_v32, %v2960_v30  ;;  %3207 = vmatprep.mubr.bf16.mxu0 %v1326_v31 }
 0x2d5   : > { %v1207_v35 = vadd.f32 %v2962_v34, %v4310_v24  ;;  %v1300_v36 = vmax.f32 %v1204_v33, 0.0 }
 0x2d7   : > { %v1301_v37 = vmax.f32 %v1207_v35, 0.0  ;;  %v2963_v38 = vpop.f32.mrb[24].mxu1 }
 0x2d8   : > { %v2964_v39 = vpop.f32.mrb[25].mxu1 }
 0x2d9   : > { %v2965_v40 = vadd.f32 %v2964_v39, %v2963_v38  ;;  %v2966_v41 = vpop.f32.mrb[26].mxu1  ;;  %v1327_v42 = vpack.c.bf16 %v1301_v37, %v1300_v36 }
 0x2da   : > { %v2967_v43 = vpop.f32.mrb[27].mxu1 }
 0x2db   : > { %v1212_v44 = vadd.f32 %v2965_v40, %v4310_v24  ;;  %v2968_v45 = vadd.f32 %v2967_v43, %v2966_v41  ;;  %3208 = vmatmul.mubr.bf16.gmra.mrb[72].mxu0 %v1327_v42 }
 0x2dd   : > { %v1215_v46 = vadd.f32 %v2968_v45, %v4310_v24  ;;  %v1302_v47 = vmax.f32 %v1212_v44, 0.0 }
 0x2df   : > { %v1303_v48 = vmax.f32 %v1215_v46, 0.0  ;;  %v2969_v49 = vpop.f32.mrb[28].mxu1 }
 0x2e0   : > { %v2970_v50 = vpop.f32.mrb[29].mxu1 }
 0x2e1   : > { %v2971_v51 = vadd.f32 %v2970_v50, %v2969_v49  ;;  %v2972_v52 = vpop.f32.mrb[30].mxu1  ;;  %v1328_v53 = vpack.c.bf16 %v1303_v48, %v1302_v47 }
 0x2e2   : > { %v2973_v54 = vpop.f32.mrb[31].mxu1 }
 0x2e3   : > { %v1220_v55 = vadd.f32 %v2971_v51, %v4310_v24  ;;  %v2974_v56 = vadd.f32 %v2973_v54, %v2972_v52  ;;  %3211 = vmatprep.mubr.bf16.mxu0 %v1328_v53 }
 0x2e5   : > { %v1223_v57 = vadd.f32 %v2974_v56, %v4310_v24  ;;  %v1304_v58 = vmax.f32 %v1220_v55, 0.0 }
 0x2e7   : > { %v1305_v59 = vmax.f32 %v1223_v57, 0.0  ;;  %v2975_v60 = vpop.f32.mrb[32].mxu1 }
 0x2e8   : > { %v2976_v61 = vpop.f32.mrb[33].mxu1 }
 0x2e9   : > { %v2977_v62 = vadd.f32 %v2976_v61, %v2975_v60  ;;  %v2978_v63 = vpop.f32.mrb[34].mxu1  ;;  %v1329_v1 = vpack.c.bf16 %v1305_v59, %v1304_v58 }
 0x2ea   : > { %v2979_v2 = vpop.f32.mrb[35].mxu1 }
 0x2eb   : > { %v1228_v3 = vadd.f32 %v2977_v62, %v4310_v24  ;;  %v2980_v4 = vadd.f32 %v2979_v2, %v2978_v63  ;;  %3212 = vmatmul.mubr.bf16.gmra.mrb[76].mxu0 %v1329_v1 }
 0x2ed   : > { %v1231_v5 = vadd.f32 %v2980_v4, %v4310_v24  ;;  %v1306_v6 = vmax.f32 %v1228_v3, 0.0 }
 0x2ef   : > { %v1307_v7 = vmax.f32 %v1231_v5, 0.0  ;;  %v2981_v8 = vpop.f32.mrb[36].mxu1 }
 0x2f0   : > { %v2982_v9 = vpop.f32.mrb[37].mxu1 }
 0x2f1   : > { %v2983_v10 = vadd.f32 %v2982_v9, %v2981_v8  ;;  %v2984_v11 = vpop.f32.mrb[38].mxu1  ;;  %v1330_v12 = vpack.c.bf16 %v1307_v7, %v1306_v6 }
 0x2f2   : > { %v2985_v13 = vpop.f32.mrb[39].mxu1 }
 0x2f3   : > { %v1236_v14 = vadd.f32 %v2983_v10, %v4310_v24  ;;  %v2986_v15 = vadd.f32 %v2985_v13, %v2984_v11  ;;  %3215 = vmatprep.mubr.bf16.mxu0 %v1330_v12 }
 0x2f5   : > { %v1239_v16 = vadd.f32 %v2986_v15, %v4310_v24  ;;  %v1308_v17 = vmax.f32 %v1236_v14, 0.0 }
 0x2f7   : > { %v1309_v18 = vmax.f32 %v1239_v16, 0.0  ;;  %v2987_v19 = vpop.f32.mrb[40].mxu1 }
 0x2f8   : > { %v2988_v22 = vpop.f32.mrb[41].mxu1 }
 0x2f9   : > { %v2989_v26 = vadd.f32 %v2988_v22, %v2987_v19  ;;  %v2990_v27 = vpop.f32.mrb[42].mxu1  ;;  %v1331_v28 = vpack.c.bf16 %v1309_v18, %v1308_v17 }
 0x2fa   : > { %v2991_v25 = vpop.f32.mrb[43].mxu1 }
 0x2fb   : > { %v1244_v29 = vadd.f32 %v2989_v26, %v4310_v24  ;;  %v2992_v30 = vadd.f32 %v2991_v25, %v2990_v27  ;;  %3216 = vmatmul.mubr.bf16.gmra.mrb[80].mxu0 %v1331_v28 }
 0x2fd   : > { %v1247_v31 = vadd.f32 %v2992_v30, %v4310_v24  ;;  %v1310_v32 = vmax.f32 %v1244_v29, 0.0 }
 0x2ff   : > { %v1311_v33 = vmax.f32 %v1247_v31, 0.0  ;;  %v2993_v34 = vpop.f32.mrb[44].mxu1  ;;  %v3449_v31 = vld [vmem:[#allocation11] ss:$8 sps:$4 sm:$0xff]  }
 0x300   : > { %v2994_v35 = vpop.f32.mrb[45].mxu1 }
 0x301   : > { %v2995_v36 = vadd.f32 %v2994_v35, %v2993_v34  ;;  %v2996_v37 = vpop.f32.mrb[46].mxu1  ;;  %v1332_v38 = vpack.c.bf16 %v1311_v33, %v1310_v32  ;;  %v3451_v32 = vld [vmem:[#allocation11 + $0x4] ss:$8 sps:$4 sm:$0xff]   ;;  %v3454_v33 = vld [vmem:[#allocation11 + $0x14] ss:$8 sps:$4 sm:$0xff]  }
 0x302   : > { %v2997_v39 = vpop.f32.mrb[47].mxu1  ;;  %2006 = vmatprep.subr.bf16.mxu0 %v3451_v32  ;;  %v4348_v34 = vld [vmem:[%s4717_s22] ss:$0 sm:$0xff]  ;;  %v3452_v35 = vld [vmem:[#allocation11 + $0x10] ss:$8 sps:$4 sm:$0xff]   ;;  %s2669_s22 = sshll.u32 %s4519_s24, 4  ;;  %s4618_s22 = int_to_ptr.vmem [resolvable:$true] %s2669_s22 }
 0x303   : > { %v1252_v40 = vadd.f32 %v2995_v36, %v4310_v24  ;;  %v2998_v41 = vadd.f32 %v2997_v39, %v2996_v37  ;;  %3219 = vmatprep.mubr.bf16.mxu0 %v1332_v38  ;;  %2007 = vmatpush1.bf16.msra.mxu0 %v3449_v31  ;;  %v3457_v36 = vld [vmem:[#allocation11 + $0x24] ss:$8 sps:$4 sm:$0xff]   ;;  %s3719_s15 = scalar_lea.vmem %s4618_s22, 4096 }
 0x304   : > { %2008 = vmatprep.subr.bf16.mxu0 %v3454_v33  ;;  %p3720_p6 = scmp.ne.s32.totalorder %s4618_s22, %s3719_s15 }
 0x305   : > { %v1255_v42 = vadd.f32 %v2998_v41, %v4310_v24  ;;  %v1312_v43 = vmax.f32 %v1252_v40, 0.0  ;;  %v3455_v41 = vld [vmem:[#allocation11 + $0x20] ss:$8 sps:$4 sm:$0xff]  }
 0x306   : > { %p3721_p10 = pnand %p3720_p6, %p4722_p5 }
 0x307   : > { %v1313_v44 = vmax.f32 %v1255_v42, 0.0  ;;  %v2999_v45 = vpop.f32.mrb[48].mxu1  ;;  %2009 = vmatpush1.bf16.msra.mxu0 %v3452_v35 }
 0x308   : > { %v3000_v46 = vpop.f32.mrb[49].mxu1  ;;  %2010 = vmatprep.subr.bf16.mxu0 %v3457_v36  ;;  %p3722_p1 = pneg %p3721_p10 }
 0x309   : > { %v3001_v47 = vadd.f32 %v3000_v46, %v2999_v45  ;;  %v3002_v48 = vpop.f32.mrb[50].mxu1  ;;  %v1333_v49 = vpack.c.bf16 %v1313_v44, %v1312_v43  ;;  %v3460_v44 = vld [vmem:[#allocation11 + $0x34] ss:$8 sps:$4 sm:$0xff]  }
 0x30a   : > { %v3003_v50 = vpop.f32.mrb[51].mxu1 }
 0x30b   : > { %v1260_v51 = vadd.f32 %v3001_v47, %v4310_v24  ;;  %v3004_v52 = vadd.f32 %v3003_v50, %v3002_v48  ;;  %3220 = vmatmul.mubr.bf16.gmra.mrb[84].mxu0 %v1333_v49  ;;  %v3458_v50 = vld [vmem:[#allocation11 + $0x30] ss:$8 sps:$4 sm:$0xff]  }
 0x30c   : > { %2011 = vmatpush1.bf16.msra.mxu0 %v3455_v41 }
 0x30d   : > { %v1263_v53 = vadd.f32 %v3004_v52, %v4310_v24  ;;  %v1314_v54 = vmax.f32 %v1260_v51, 0.0  ;;  %2012 = vmatprep.subr.bf16.mxu0 %v3460_v44  ;;  %v3463_v52 = vld [vmem:[#allocation11 + $0x44] ss:$8 sps:$4 sm:$0xff]  }
 0x30f   : > { %v1315_v55 = vmax.f32 %v1263_v53, 0.0  ;;  %v3005_v56 = vpop.f32.mrb[52].mxu1 }
 0x310   : > { %v3006_v57 = vpop.f32.mrb[53].mxu1  ;;  %2013 = vmatpush1.bf16.msra.mxu0 %v3458_v50 }
 0x311   : > { %v3007_v58 = vadd.f32 %v3006_v57, %v3005_v56  ;;  %v3008_v59 = vpop.f32.mrb[54].mxu1  ;;  %v1334_v60 = vpack.c.bf16 %v1315_v55, %v1314_v54  ;;  %v3461_v54 = vld [vmem:[#allocation11 + $0x40] ss:$8 sps:$4 sm:$0xff]   ;;  %2014 = vmatprep.subr.bf16.mxu0 %v3463_v52  ;;  %v3466_v55 = vld [vmem:[#allocation11 + $0x54] ss:$8 sps:$4 sm:$0xff]  }
 0x312   : > { %v3009_v61 = vpop.f32.mrb[55].mxu1  ;;  %v3464_v56 = vld [vmem:[#allocation11 + $0x50] ss:$8 sps:$4 sm:$0xff]   ;;  %v3469_v57 = vld [vmem:[#allocation11 + $0x64] ss:$8 sps:$4 sm:$0xff]  }
 0x313   : > { %v1268_v62 = vadd.f32 %v3007_v58, %v4310_v24  ;;  %v3010_v63 = vadd.f32 %v3009_v61, %v3008_v59  ;;  %3223 = vmatprep.mubr.bf16.mxu0 %v1334_v60 }
 0x314   : > { %2015 = vmatpush1.bf16.msra.mxu0 %v3461_v54 }
 0x315   : > { %v1271_v1 = vadd.f32 %v3010_v63, %v4310_v24  ;;  %v1316_v2 = vmax.f32 %v1268_v62, 0.0  ;;  %2016 = vmatprep.subr.bf16.mxu0 %v3466_v55  ;;  %v3467_v63 = vld [vmem:[#allocation11 + $0x60] ss:$8 sps:$4 sm:$0xff]  }
 0x317   : > { %v1317_v3 = vmax.f32 %v1271_v1, 0.0  ;;  %v3011_v4 = vpop.f32.mrb[56].mxu1 }
 0x318   : > { %v3012_v5 = vpop.f32.mrb[57].mxu1  ;;  %2017 = vmatpush1.bf16.msra.mxu0 %v3464_v56 }
 0x319   : > { %v3013_v6 = vadd.f32 %v3012_v5, %v3011_v4  ;;  %v3014_v7 = vpop.f32.mrb[58].mxu1  ;;  %v1335_v8 = vpack.c.bf16 %v1317_v3, %v1316_v2  ;;  %2018 = vmatprep.subr.bf16.mxu0 %v3469_v57 }
 0x31a   : > { %v3015_v9 = vpop.f32.mrb[59].mxu1 }
 0x31b   : > { %v1276_v10 = vadd.f32 %v3013_v6, %v4310_v24  ;;  %v3016_v11 = vadd.f32 %v3015_v9, %v3014_v7  ;;  %3224 = vmatmul.mubr.bf16.gmra.mrb[88].mxu0 %v1335_v8 }
 0x31c   : > { %2019 = vmatpush1.bf16.msra.mxu0 %v3467_v63 }
 0x31d   : > { %v1279_v12 = vadd.f32 %v3016_v11, %v4310_v24  ;;  %v1318_v13 = vmax.f32 %v1276_v10, 0.0 }
 0x31f   : > { %v1319_v14 = vmax.f32 %v1279_v12, 0.0  ;;  %v3017_v15 = vpop.f32.mrb[60].mxu1 }
 0x320   : > { %v3018_v16 = vpop.f32.mrb[61].mxu1 }
 0x321   : > { %v3019_v17 = vadd.f32 %v3018_v16, %v3017_v15  ;;  %v3020_v18 = vpop.f32.mrb[62].mxu1  ;;  %v1336_v19 = vpack.c.bf16 %v1319_v14, %v1318_v13 }
 0x322   : > { %v3021_v22 = vpop.f32.mrb[63].mxu1 }
 0x323   : > { %v1284_v26 = vadd.f32 %v3019_v17, %v4310_v24  ;;  %v3022_v27 = vadd.f32 %v3021_v22, %v3020_v18  ;;  %3227 = vmatprep.mubr.bf16.mxu0 %v1336_v19 }
 0x325   : > { %v1287_v28 = vadd.f32 %v3022_v27, %v4310_v24  ;;  %v1320_v25 = vmax.f32 %v1284_v26, 0.0 }
 0x327   : > { %v1321_v29 = vmax.f32 %v1287_v28, 0.0 }
 0x329   : > { %v1337_v30 = vpack.c.bf16 %v1321_v29, %v1320_v25 }
 0x32b   : > { %3228 = vmatmul.mubr.bf16.gmra.mrb[92].mxu0 %v1337_v30 }
 0x32c   : > { %2038 = vmatprep.mubr.bf16.mxu0 %v3810_v0 }
 0x38e   : > { %v3201_v24 = vpop.f32.mrb[64].mxu0 }
 0x38f   : > { %v1452_v37 = vadd.f32 %v3201_v24, %v4348_v34  ;;  %v1443_v38 = vpop.f32.mrb[65].mxu0 }
 0x390   : > { %v1444_v39 = vadd.f32 %v4348_v34, %v1443_v38  ;;  %v3202_v40 = vpop.f32.mrb[66].mxu0 }
 0x391   : > { %v1455_v42 = vadd.f32 %v3202_v40, %v4348_v34  ;;  %v1446_v43 = vpop.f32.mrb[67].mxu0  ;;  %v1572_v46 = vmax.f32 %v1452_v37, 0.0 }
 0x392   : > { %v1447_v45 = vadd.f32 %v4348_v34, %v1446_v43  ;;  %v1570_v48 = vmax.f32 %v1444_v39, 0.0 }
 0x393   : > { %v1573_v47 = vmax.f32 %v1455_v42, 0.0 }
 0x394   : > { %v1571_v49 = vmax.f32 %v1447_v45, 0.0 }
 0x395   : > { %v1603_v51 = vpack.c.bf16 %v1573_v47, %v1572_v46 }
 0x396   : > { %v1602_v53 = vpack.c.bf16 %v1571_v49, %v1570_v48 }
 0x398   : > { %3247 = vmatprep.mubr.bf16.mxu1 %v1602_v53 }
 0x399   : > { %3248 = vmatmul.mubr.bf16.vlgmr.msra.gmra.mrb[64].mxu1 %v1603_v51 }
 0x39e   : > { %v3205_v58 = vpop.f32.mrb[68].mxu0 }
 0x39f   : > { %v1468_v59 = vadd.f32 %v3205_v58, %v4348_v34  ;;  %v1459_v60 = vpop.f32.mrb[69].mxu0 }
 0x3a0   : > { %v1460_v61 = vadd.f32 %v4348_v34, %v1459_v60  ;;  %v3206_v62 = vpop.f32.mrb[70].mxu0 }
 0x3a1   : > { %v1471_v1 = vadd.f32 %v3206_v62, %v4348_v34  ;;  %v1462_v2 = vpop.f32.mrb[71].mxu0  ;;  %v1576_v4 = vmax.f32 %v1468_v59, 0.0 }
 0x3a2   : > { %v1463_v3 = vadd.f32 %v4348_v34, %v1462_v2  ;;  %v1574_v6 = vmax.f32 %v1460_v61, 0.0 }
 0x3a3   : > { %v1577_v5 = vmax.f32 %v1471_v1, 0.0 }
 0x3a4   : > { %v1575_v7 = vmax.f32 %v1463_v3, 0.0 }
 0x3a5   : > { %v1605_v8 = vpack.c.bf16 %v1577_v5, %v1576_v4 }
 0x3a6   : > { %v1604_v9 = vpack.c.bf16 %v1575_v7, %v1574_v6 }
 0x3a8   : > { %3251 = vmatprep.mubr.bf16.mxu1 %v1604_v9 }
 0x3a9   : > { %3252 = vmatmul.mubr.bf16.gmra.mrb[68].mxu1 %v1605_v8 }
 0x3ae   : > { %v3209_v10 = vpop.f32.mrb[72].mxu0 }
 0x3af   : > { %v1484_v11 = vadd.f32 %v3209_v10, %v4348_v34  ;;  %v1475_v12 = vpop.f32.mrb[73].mxu0 }
 0x3b0   : > { %v1476_v13 = vadd.f32 %v4348_v34, %v1475_v12  ;;  %v3210_v14 = vpop.f32.mrb[74].mxu0  ;;  %v3470_v12 = vld [vmem:[#allocation11 + $0x70] ss:$8 sps:$4 sm:$0xff]  }
 0x3b1   : > { %v1487_v15 = vadd.f32 %v3210_v14, %v4348_v34  ;;  %v1478_v16 = vpop.f32.mrb[75].mxu0  ;;  %v1580_v18 = vmax.f32 %v1484_v11, 0.0 }
 0x3b2   : > { %v1479_v17 = vadd.f32 %v4348_v34, %v1478_v16  ;;  %v1578_v22 = vmax.f32 %v1476_v13, 0.0  ;;  %v3472_v13 = vld [vmem:[#allocation11 + $0x74] ss:$8 sps:$4 sm:$0xff]  }
 0x3b3   : > { %v1581_v19 = vmax.f32 %v1487_v15, 0.0  ;;  %2020 = vmatprep.subr.bf16.mxu0 %v3472_v13  ;;  %v3484_v13 = vld [vmem:[#allocation13 + $0x28] sm:$0xff]  }
 0x3b4   : > { %v1579_v26 = vmax.f32 %v1479_v17, 0.0  ;;  %2021 = vmatpush1.bf16.msra.mxu0 %v3470_v12 }
 0x3b5   : > { %v1607_v27 = vpack.c.bf16 %v1581_v19, %v1580_v18 }
 0x3b6   : > { %v1606_v28 = vpack.c.bf16 %v1579_v26, %v1578_v22 }
 0x3b8   : > { %3255 = vmatprep.mubr.bf16.mxu1 %v1606_v28 }
 0x3b9   : > { %3256 = vmatmul.mubr.bf16.gmra.mrb[72].mxu1 %v1607_v27 }
 0x3be   : > { %v3213_v25 = vpop.f32.mrb[76].mxu0 }
 0x3bf   : > { %v1500_v29 = vadd.f32 %v3213_v25, %v4348_v34  ;;  %v1491_v30 = vpop.f32.mrb[77].mxu0 }
 0x3c0   : > { %v1492_v31 = vadd.f32 %v4348_v34, %v1491_v30  ;;  %v3214_v32 = vpop.f32.mrb[78].mxu0 }
 0x3c1   : > { %v1503_v33 = vadd.f32 %v3214_v32, %v4348_v34  ;;  %v1494_v35 = vpop.f32.mrb[79].mxu0  ;;  %v1584_v24 = vmax.f32 %v1500_v29, 0.0 }
 0x3c2   : > { %v1495_v36 = vadd.f32 %v4348_v34, %v1494_v35  ;;  %v1582_v38 = vmax.f32 %v1492_v31, 0.0 }
 0x3c3   : > { %v1585_v37 = vmax.f32 %v1503_v33, 0.0 }
 0x3c4   : > { %v1583_v39 = vmax.f32 %v1495_v36, 0.0 }
 0x3c5   : > { %v1609_v40 = vpack.c.bf16 %v1585_v37, %v1584_v24 }
 0x3c6   : > { %v1608_v41 = vpack.c.bf16 %v1583_v39, %v1582_v38 }
 0x3c8   : > { %3259 = vmatprep.mubr.bf16.mxu1 %v1608_v41  ;;  %v4385_v41 = vld [vmem:[%s4718_s1] ss:$0 sm:$0xff]  ;;  %s4721_s1 = sld [smem:[#allocation25_spill]] }
 0x3c9   : > { %3260 = vmatmul.mubr.bf16.gmra.mrb[76].mxu1 %v1609_v40 }
 0x3ce   : > { %v3217_v42 = vpop.f32.mrb[80].mxu0  ;;  %s4616_s6 = scalar_lea.hbm %s4721_s1, %s2910_s29 }
 0x3cf   : > { %v1516_v43 = vadd.f32 %v3217_v42, %v4348_v34  ;;  %v1507_v44 = vpop.f32.mrb[81].mxu0 }
 0x3d0   : > { %v1508_v45 = vadd.f32 %v4348_v34, %v1507_v44  ;;  %v3218_v46 = vpop.f32.mrb[82].mxu0 }
 0x3d1   : > { %v1519_v47 = vadd.f32 %v3218_v46, %v4348_v34  ;;  %v1510_v48 = vpop.f32.mrb[83].mxu0  ;;  %v1588_v50 = vmax.f32 %v1516_v43, 0.0  ;;  %v3473_v46 = vld [vmem:[#allocation13 + $0x40] sm:$0xff]  }
 0x3d2   : > { %v1511_v49 = vadd.f32 %v4348_v34, %v1510_v48  ;;  %v1586_v52 = vmax.f32 %v1508_v45, 0.0  ;;  %v3475_v48 = vld [vmem:[#allocation13 + $0x48] sm:$0xff]   ;;  %3071 = vmatprep.subr.bf16.mxu1 %v3473_v46 }
 0x3d3   : > { %v1589_v51 = vmax.f32 %v1519_v47, 0.0  ;;  %v3474_v47 = vld [vmem:[#allocation13] sm:$0xff]  }
 0x3d4   : > { %v1587_v53 = vmax.f32 %v1511_v49, 0.0  ;;  %3072 = vmatpush3.bf16.msra.mxu1 %v3474_v47 }
 0x3d5   : > { %v1611_v54 = vpack.c.bf16 %v1589_v51, %v1588_v50  ;;  %3073 = vmatprep.subr.bf16.mxu1 %v3475_v48 }
 0x3d6   : > { %v1610_v55 = vpack.c.bf16 %v1587_v53, %v1586_v52 }
 0x3d8   : > { %3263 = vmatprep.mubr.bf16.mxu1 %v1610_v55 }
 0x3d9   : > { %3264 = vmatmul.mubr.bf16.gmra.mrb[80].mxu1 %v1611_v54  ;;  %v3476_v54 = vld [vmem:[#allocation13 + $0x8] sm:$0xff]  }
 0x3da   : > { %3074 = vmatpush3.bf16.msra.mxu1 %v3476_v54 }
 0x3de   : > { %v3221_v56 = vpop.f32.mrb[84].mxu0 }
 0x3df   : > { %v1532_v57 = vadd.f32 %v3221_v56, %v4348_v34  ;;  %v1523_v58 = vpop.f32.mrb[85].mxu0 }
 0x3e0   : > { %v1524_v59 = vadd.f32 %v4348_v34, %v1523_v58  ;;  %v3222_v60 = vpop.f32.mrb[86].mxu0 }
 0x3e1   : > { %v1535_v61 = vadd.f32 %v3222_v60, %v4348_v34  ;;  %v1526_v62 = vpop.f32.mrb[87].mxu0  ;;  %v1592_v1 = vmax.f32 %v1532_v57, 0.0  ;;  %v3477_v57 = vld [vmem:[#allocation13 + $0x50] sm:$0xff]  }
 0x3e2   : > { %v1527_v63 = vadd.f32 %v4348_v34, %v1526_v62  ;;  %v1590_v3 = vmax.f32 %v1524_v59, 0.0  ;;  %v3478_v60 = vld [vmem:[#allocation13 + $0x10] sm:$0xff]   ;;  %3075 = vmatprep.subr.bf16.mxu1 %v3477_v57  ;;  %v3480_v62 = vld [vmem:[#allocation13 + $0x18] sm:$0xff]  }
 0x3e3   : > { %v1593_v2 = vmax.f32 %v1535_v61, 0.0  ;;  %v3479_v61 = vld [vmem:[#allocation13 + $0x58] sm:$0xff]   ;;  %3076 = vmatpush3.bf16.msra.mxu1 %v3478_v60 }
 0x3e4   : > { %v1591_v4 = vmax.f32 %v1527_v63, 0.0  ;;  %3077 = vmatprep.subr.bf16.mxu1 %v3479_v61  ;;  %v3481_v63 = vld [vmem:[#allocation13 + $0x60] sm:$0xff]  }
 0x3e5   : > { %v1613_v5 = vpack.c.bf16 %v1593_v2, %v1592_v1 }
 0x3e6   : > { %v1612_v6 = vpack.c.bf16 %v1591_v4, %v1590_v3  ;;  %v3482_v4 = vld [vmem:[#allocation13 + $0x20] sm:$0xff]  }
 0x3e7   : > { %3078 = vmatpush3.bf16.msra.mxu1 %v3480_v62 }
 0x3e8   : > { %3267 = vmatprep.mubr.bf16.mxu1 %v1612_v6  ;;  %3079 = vmatprep.subr.bf16.mxu1 %v3481_v63 }
 0x3e9   : > { %3268 = vmatmul.mubr.bf16.gmra.mrb[84].mxu1 %v1613_v5 }
 0x3eb   : > { %3080 = vmatpush3.bf16.msra.mxu1 %v3482_v4 }
 0x3ee   : > { %v3225_v7 = vpop.f32.mrb[88].mxu0 }
 0x3ef   : > { %v1548_v8 = vadd.f32 %v3225_v7, %v4348_v34  ;;  %v1539_v9 = vpop.f32.mrb[89].mxu0  ;;  %v3483_v7 = vld [vmem:[#allocation13 + $0x68] sm:$0xff]  }
 0x3f0   : > { %v1540_v10 = vadd.f32 %v4348_v34, %v1539_v9  ;;  %v3226_v11 = vpop.f32.mrb[90].mxu0  ;;  %3081 = vmatprep.subr.bf16.mxu1 %v3483_v7 }
 0x3f1   : > { %v1551_v14 = vadd.f32 %v3226_v11, %v4348_v34  ;;  %v1542_v15 = vpop.f32.mrb[91].mxu0  ;;  %v1596_v17 = vmax.f32 %v1548_v8, 0.0  ;;  %3082 = vmatpush3.bf16.msra.mxu1 %v3484_v13 }
 0x3f2   : > { %v1543_v16 = vadd.f32 %v4348_v34, %v1542_v15  ;;  %v1594_v19 = vmax.f32 %v1540_v10, 0.0 }
 0x3f3   : > { %v1597_v18 = vmax.f32 %v1551_v14, 0.0 }
 0x3f4   : > { %v1595_v22 = vmax.f32 %v1543_v16, 0.0  ;;  %v3485_v16 = vld [vmem:[#allocation13 + $0x70] sm:$0xff]  }
 0x3f5   : > { %v1615_v26 = vpack.c.bf16 %v1597_v18, %v1596_v17  ;;  %3083 = vmatprep.subr.bf16.mxu1 %v3485_v16 }
 0x3f6   : > { %v1614_v27 = vpack.c.bf16 %v1595_v22, %v1594_v19  ;;  %v3486_v19 = vld [vmem:[#allocation13 + $0x30] sm:$0xff]  }
 0x3f7   : > { %3084 = vmatpush3.bf16.msra.mxu1 %v3486_v19 }
 0x3f8   : > { %3271 = vmatprep.mubr.bf16.mxu1 %v1614_v27 }
 0x3f9   : > { %3272 = vmatmul.mubr.bf16.gmra.mrb[88].mxu1 %v1615_v26 }
 0x3fe   : > { %v3229_v28 = vpop.f32.mrb[92].mxu0 }
 0x3ff   : > { %v1564_v25 = vadd.f32 %v3229_v28, %v4348_v34  ;;  %v1555_v29 = vpop.f32.mrb[93].mxu0 }
 0x400   : > { %v1556_v30 = vadd.f32 %v4348_v34, %v1555_v29  ;;  %v3230_v31 = vpop.f32.mrb[94].mxu0 }
 0x401   : > { %v1567_v32 = vadd.f32 %v3230_v31, %v4348_v34  ;;  %v1558_v33 = vpop.f32.mrb[95].mxu0  ;;  %v1600_v36 = vmax.f32 %v1564_v25, 0.0 }
 0x402   : > { %v1559_v35 = vadd.f32 %v4348_v34, %v1558_v33  ;;  %v1598_v37 = vmax.f32 %v1556_v30, 0.0 }
 0x403   : > { %v1601_v24 = vmax.f32 %v1567_v32, 0.0 }
 0x404   : > { %v1599_v38 = vmax.f32 %v1559_v35, 0.0 }
 0x405   : > { %v1617_v39 = vpack.c.bf16 %v1601_v24, %v1600_v36 }
 0x406   : > { %v1616_v40 = vpack.c.bf16 %v1599_v38, %v1598_v37 }
 0x408   : > { %3275 = vmatprep.mubr.bf16.mxu1 %v1616_v40 }
 0x409   : > { %3276 = vmatmul.mubr.bf16.gmra.mrb[92].mxu1 %v1617_v39 }
 0x46c   : > { %v3249_v42 = vpop.f32.mrb[64].mxu1 }
 0x46d   : > { %v1732_v43 = vadd.f32 %v3249_v42, %v4385_v41  ;;  %v1723_v44 = vpop.f32.mrb[65].mxu1 }
 0x46e   : > { %v1724_v45 = vadd.f32 %v4385_v41, %v1723_v44  ;;  %v3250_v34 = vpop.f32.mrb[66].mxu1 }
 0x46f   : > { %v1735_v49 = vadd.f32 %v3250_v34, %v4385_v41  ;;  %v1726_v50 = vpop.f32.mrb[67].mxu1  ;;  %v1852_v52 = vmax.f32 %v1732_v43, 0.0 }
 0x470   : > { %v1727_v51 = vadd.f32 %v4385_v41, %v1726_v50  ;;  %v1850_v55 = vmax.f32 %v1724_v45, 0.0 }
 0x471   : > { %v1853_v53 = vmax.f32 %v1735_v49, 0.0 }
 0x472   : > { %v1851_v56 = vmax.f32 %v1727_v51, 0.0 }
 0x473   : > { %v1883_v58 = vpack.c.bf16 %v1853_v53, %v1852_v52 }
 0x474   : > { %v1882_v59 = vpack.c.bf16 %v1851_v56, %v1850_v55 }
 0x476   : > { %2039 = vmatmul.mubr.bf16.vlgmr.msra.gmra.mrb[96].mxu0 %v1882_v59 }
 0x477   : > { %2048 = vmatprep.mubr.bf16.mxu0 %v3810_v0 }
 0x47c   : > { %v3253_v1 = vpop.f32.mrb[68].mxu1 }
 0x47d   : > { %v1748_v2 = vadd.f32 %v3253_v1, %v4385_v41  ;;  %v1739_v3 = vpop.f32.mrb[69].mxu1 }
 0x47e   : > { %v1740_v5 = vadd.f32 %v4385_v41, %v1739_v3  ;;  %v3254_v6 = vpop.f32.mrb[70].mxu1  ;;  %2049 = vmatmul.mubr.bf16.gmra.mrb[100].mxu0 %v1883_v58 }
 0x47f   : > { %v1751_v8 = vadd.f32 %v3254_v6, %v4385_v41  ;;  %v1742_v9 = vpop.f32.mrb[71].mxu1  ;;  %2058 = vmatprep.mubr.bf16.mxu0 %v3810_v0  ;;  %v1856_v11 = vmax.f32 %v1748_v2, 0.0 }
 0x480   : > { %v1743_v10 = vadd.f32 %v4385_v41, %v1742_v9  ;;  %v1854_v14 = vmax.f32 %v1740_v5, 0.0 }
 0x481   : > { %v1857_v12 = vmax.f32 %v1751_v8, 0.0 }
 0x482   : > { %v1855_v15 = vmax.f32 %v1743_v10, 0.0 }
 0x483   : > { %v1885_v17 = vpack.c.bf16 %v1857_v12, %v1856_v11 }
 0x484   : > { %v1884_v18 = vpack.c.bf16 %v1855_v15, %v1854_v14 }
 0x486   : > { %2059 = vmatmul.mubr.bf16.gmra.mrb[104].mxu0 %v1884_v18 }
 0x487   : > { %2068 = vmatprep.mubr.bf16.mxu0 %v3810_v0 }
 0x48c   : > { %v3257_v22 = vpop.f32.mrb[72].mxu1 }
 0x48d   : > { %v1764_v26 = vadd.f32 %v3257_v22, %v4385_v41  ;;  %v1755_v27 = vpop.f32.mrb[73].mxu1 }
 0x48e   : > { %v1756_v28 = vadd.f32 %v4385_v41, %v1755_v27  ;;  %v3258_v25 = vpop.f32.mrb[74].mxu1  ;;  %2069 = vmatmul.mubr.bf16.gmra.mrb[108].mxu0 %v1885_v17  ;;  %v3487_v27 = vld [vmem:[#allocation13 + $0x78] sm:$0xff]  }
 0x48f   : > { %v1767_v29 = vadd.f32 %v3258_v25, %v4385_v41  ;;  %v1758_v30 = vpop.f32.mrb[75].mxu1  ;;  %2078 = vmatprep.mubr.bf16.mxu0 %v3810_v0  ;;  %v1860_v32 = vmax.f32 %v1764_v26, 0.0  ;;  %3085 = vmatprep.subr.bf16.mxu1 %v3487_v27 }
 0x490   : > { %v1759_v31 = vadd.f32 %v4385_v41, %v1758_v30  ;;  %v1858_v35 = vmax.f32 %v1756_v28, 0.0 }
 0x491   : > { %v1861_v33 = vmax.f32 %v1767_v29, 0.0  ;;  %v3488_v29 = vld [vmem:[#allocation13 + $0x38] sm:$0xff]  }
 0x492   : > { %v1859_v36 = vmax.f32 %v1759_v31, 0.0  ;;  %3086 = vmatpush3.bf16.msra.mxu1 %v3488_v29 }
 0x493   : > { %v1887_v24 = vpack.c.bf16 %v1861_v33, %v1860_v32 }
 0x494   : > { %v1886_v37 = vpack.c.bf16 %v1859_v36, %v1858_v35 }
 0x496   : > { %2079 = vmatmul.mubr.bf16.gmra.mrb[112].mxu0 %v1886_v37 }
 0x497   : > { %2088 = vmatprep.mubr.bf16.mxu0 %v3810_v0 }
 0x49c   : > { %v3261_v38 = vpop.f32.mrb[76].mxu1 }
 0x49d   : > { %v1780_v39 = vadd.f32 %v3261_v38, %v4385_v41  ;;  %v1771_v40 = vpop.f32.mrb[77].mxu1 }
 0x49e   : > { %v1772_v42 = vadd.f32 %v4385_v41, %v1771_v40  ;;  %v3262_v43 = vpop.f32.mrb[78].mxu1  ;;  %2089 = vmatmul.mubr.bf16.gmra.mrb[116].mxu0 %v1887_v24 }
 0x49f   : > { %v1783_v44 = vadd.f32 %v3262_v43, %v4385_v41  ;;  %v1774_v45 = vpop.f32.mrb[79].mxu1  ;;  %2098 = vmatprep.mubr.bf16.mxu0 %v3810_v0  ;;  %v1864_v46 = vmax.f32 %v1780_v39, 0.0 }
 0x4a0   : > { %v1775_v34 = vadd.f32 %v4385_v41, %v1774_v45  ;;  %v1862_v48 = vmax.f32 %v1772_v42, 0.0 }
 0x4a1   : > { %v1865_v47 = vmax.f32 %v1783_v44, 0.0 }
 0x4a2   : > { %v1863_v49 = vmax.f32 %v1775_v34, 0.0 }
 0x4a3   : > { %v1889_v50 = vpack.c.bf16 %v1865_v47, %v1864_v46 }
 0x4a4   : > { %v1888_v51 = vpack.c.bf16 %v1863_v49, %v1862_v48 }
 0x4a6   : > { %2099 = vmatmul.mubr.bf16.gmra.mrb[120].mxu0 %v1888_v51  ;;  %v1914_v51 = vld [vmem:[%s4719_s18] sm:$0x3]  ;;  %s3811_s18 = smov [#allocation14]  }
 0x4a7   : > { %2108 = vmatprep.mubr.bf16.mxu0 %v3810_v0  ;;  %s3723_s10 = sshll.u32 %s3811_s18, 4  ;;  %s3724_s10 = int_to_ptr.vmem [resolvable:$false] %s3723_s10 }
 0x4a8   : > { %s3725_s23 = scalar_lea.vmem %s3724_s10, 8192  ;;  %p3726_p11 = scmp.lt.s32.totalorder %s4618_s22, %s3724_s10 }
 0x4a9   : > { %p3727_p12 = scmp.lt.s32.totalorder %s3725_s23, %s3719_s15 }
 0x4ab   : > { %p3728_p13 = por %p3727_p12, %p3726_p11 }
 0x4ac   : > { %v3265_v52 = vpop.f32.mrb[80].mxu1 }
 0x4ad   : > { %v1796_v53 = vadd.f32 %v3265_v52, %v4385_v41  ;;  %v1787_v54 = vpop.f32.mrb[81].mxu1  ;;  %v4439_v52 = vrot.slane %v1914_v51, %v617_v21  ;;  %p3729_p8 = pnand %p3728_p13, %p3722_p1 }
 0x4ae   : > { %v1788_v55 = vadd.f32 %v4385_v41, %v1787_v54  ;;  %v3266_v56 = vpop.f32.mrb[82].mxu1  ;;  %2109 = vmatmul.mubr.bf16.gmra.mrb[124].mxu0 %v1889_v50 }
 0x4af   : > { %v1799_v57 = vadd.f32 %v3266_v56, %v4385_v41  ;;  %v1790_v58 = vpop.f32.mrb[83].mxu1  ;;  %2118 = vmatprep.mubr.bf16.mxu0 %v3810_v0  ;;  %v1868_v60 = vmax.f32 %v1796_v53, 0.0 }
 0x4b0   : > { %v1791_v59 = vadd.f32 %v4385_v41, %v1790_v58  ;;  %v1866_v62 = vmax.f32 %v1788_v55, 0.0 }
 0x4b1   : > { %v1869_v61 = vmax.f32 %v1799_v57, 0.0 }
 0x4b2   : > { %v1867_v63 = vmax.f32 %v1791_v59, 0.0 }
 0x4b3   : > { %v1891_v1 = vpack.c.bf16 %v1869_v61, %v1868_v60 }
 0x4b4   : > { %v1890_v2 = vpack.c.bf16 %v1867_v63, %v1866_v62 }
 0x4b6   : > { %2119 = vmatmul.mubr.bf16.gmra.mrb[128].mxu0 %v1890_v2 }
 0x4b7   : > { %2128 = vmatprep.mubr.bf16.mxu0 %v3810_v0 }
 0x4bc   : > { %v3269_v3 = vpop.f32.mrb[84].mxu1 }
 0x4bd   : > { %v1812_v4 = vadd.f32 %v3269_v3, %v4385_v41  ;;  %v1803_v5 = vpop.f32.mrb[85].mxu1 }
 0x4be   : > { %v1804_v6 = vadd.f32 %v4385_v41, %v1803_v5  ;;  %v3270_v7 = vpop.f32.mrb[86].mxu1  ;;  %2129 = vmatmul.mubr.bf16.gmra.mrb[132].mxu0 %v1891_v1 }
 0x4bf   : > { %v1815_v8 = vadd.f32 %v3270_v7, %v4385_v41  ;;  %v1806_v9 = vpop.f32.mrb[87].mxu1  ;;  %2138 = vmatprep.mubr.bf16.mxu0 %v3810_v0  ;;  %v1872_v11 = vmax.f32 %v1812_v4, 0.0 }
 0x4c0   : > { %v1807_v10 = vadd.f32 %v4385_v41, %v1806_v9  ;;  %v1870_v13 = vmax.f32 %v1804_v6, 0.0 }
 0x4c1   : > { %v1873_v12 = vmax.f32 %v1815_v8, 0.0 }
 0x4c2   : > { %v1871_v14 = vmax.f32 %v1807_v10, 0.0 }
 0x4c3   : > { %v1893_v15 = vpack.c.bf16 %v1873_v12, %v1872_v11 }
 0x4c4   : > { %v1892_v16 = vpack.c.bf16 %v1871_v14, %v1870_v13 }
 0x4c6   : > { %2139 = vmatmul.mubr.bf16.gmra.mrb[136].mxu0 %v1892_v16 }
 0x4c7   : > { %2148 = vmatprep.mubr.bf16.mxu0 %v3810_v0 }
 0x4cc   : > { %v3273_v17 = vpop.f32.mrb[88].mxu1 }
 0x4cd   : > { %v1828_v18 = vadd.f32 %v3273_v17, %v4385_v41  ;;  %v1819_v19 = vpop.f32.mrb[89].mxu1 }
 0x4ce   : > { %v1820_v22 = vadd.f32 %v4385_v41, %v1819_v19  ;;  %v3274_v26 = vpop.f32.mrb[90].mxu1  ;;  %2149 = vmatmul.mubr.bf16.gmra.mrb[140].mxu0 %v1893_v15 }
 0x4cf   : > { %v1831_v28 = vadd.f32 %v3274_v26, %v4385_v41  ;;  %v1822_v25 = vpop.f32.mrb[91].mxu1  ;;  %2158 = vmatprep.mubr.bf16.mxu0 %v3810_v0  ;;  %v1876_v31 = vmax.f32 %v1828_v18, 0.0 }
 0x4d0   : > { %v1823_v30 = vadd.f32 %v4385_v41, %v1822_v25  ;;  %v1874_v33 = vmax.f32 %v1820_v22, 0.0 }
 0x4d1   : > { %v1877_v32 = vmax.f32 %v1831_v28, 0.0 }
 0x4d2   : > { %v1875_v35 = vmax.f32 %v1823_v30, 0.0 }
 0x4d3   : > { %v1895_v36 = vpack.c.bf16 %v1877_v32, %v1876_v31 }
 0x4d4   : > { %v1894_v24 = vpack.c.bf16 %v1875_v35, %v1874_v33 }
 0x4d6   : > { %2159 = vmatmul.mubr.bf16.gmra.mrb[144].mxu0 %v1894_v24 }
 0x4d7   : > { %2168 = vmatprep.mubr.bf16.mxu0 %v3810_v0 }
 0x4dc   : > { %v3277_v37 = vpop.f32.mrb[92].mxu1 }
 0x4dd   : > { %v1844_v38 = vadd.f32 %v3277_v37, %v4385_v41  ;;  %v1835_v39 = vpop.f32.mrb[93].mxu1 }
 0x4de   : > { %v1836_v40 = vadd.f32 %v4385_v41, %v1835_v39  ;;  %v3278_v42 = vpop.f32.mrb[94].mxu1  ;;  %2169 = vmatmul.mubr.bf16.gmra.mrb[148].mxu0 %v1895_v36 }
 0x4df   : > { %v1847_v43 = vadd.f32 %v3278_v42, %v4385_v41  ;;  %v1838_v44 = vpop.f32.mrb[95].mxu1  ;;  %2178 = vmatprep.mubr.bf16.mxu0 %v3810_v0  ;;  %v1880_v34 = vmax.f32 %v1844_v38, 0.0 }
 0x4e0   : > { %v1839_v45 = vadd.f32 %v4385_v41, %v1838_v44  ;;  %v1878_v47 = vmax.f32 %v1836_v40, 0.0  ;;  %v4443_v41 = vrot.slane %v1914_v51, %v621_v23 }
 0x4e1   : > { %v1881_v46 = vmax.f32 %v1847_v43, 0.0 }
 0x4e2   : > { %v1879_v48 = vmax.f32 %v1839_v45, 0.0 }
 0x4e3   : > { %v1897_v49 = vpack.c.bf16 %v1881_v46, %v1880_v34 }
 0x4e4   : > { %v1896_v50 = vpack.c.bf16 %v1879_v48, %v1878_v47 }
 0x4e6   : > { %2179 = vmatmul.mubr.bf16.gmra.mrb[152].mxu0 %v1896_v50 }
 0x4e7   : > { %2188 = vmatprep.mubr.bf16.mxu0 %v3810_v0 }
 0x4ee   : > { %2189 = vmatmul.mubr.bf16.gmra.mrb[156].mxu0 %v1897_v49 }
 0x549   : > { %v2040_v53 = vpop.f32.mrb[96].mxu0 }
 0x54a   : > { %v2041_v54 = vadd.f32 %v2040_v53, %v4439_v52  ;;  %v2042_v55 = vpop.f32.mrb[97].mxu0 }
 0x54b   : > { %v2043_v56 = vadd.f32 %v2042_v55, %v4443_v41  ;;  %v2044_v0 = vpop.f32.mrb[98].mxu0 }
 0x54c   : > { %v2045_v57 = vadd.f32 %v2044_v0, %v4439_v52  ;;  %v2046_v58 = vpop.f32.mrb[99].mxu0  ;;  %v2199_v60 = vmax.f32 %v2041_v54, 0.0 }
 0x54d   : > { %v2047_v59 = vadd.f32 %v2046_v58, %v4443_v41  ;;  %v2200_v21 = vmax.f32 %v2043_v56, 0.0 }
 0x54e   : > { %v2201_v61 = vmax.f32 %v2045_v57, 0.0 }
 0x54f   : > { %v2202_v62 = vmax.f32 %v2047_v59, 0.0 }
 0x550   : > { %v2263_v63 = vpack.c.bf16 %v2201_v61, %v2199_v60 }
 0x551   : > { %v2264_v20 = vpack.c.bf16 %v2202_v62, %v2200_v21  ;;  %v2050_v23 = vpop.f32.mrb[100].mxu0 }
 0x552   : > { %v2051_v1 = vadd.f32 %v2050_v23, %v4439_v52  ;;  %v2052_v2 = vpop.f32.mrb[101].mxu0 }
 0x553   : > { %v2053_v3 = vadd.f32 %v2052_v2, %v4443_v41  ;;  %v2054_v4 = vpop.f32.mrb[102].mxu0  ;;  %2462 = vmatprep.mubr.bf16.mxu1 %v2264_v20 }
 0x554   : > { %v2055_v5 = vadd.f32 %v2054_v4, %v4439_v52  ;;  %v2056_v6 = vpop.f32.mrb[103].mxu0  ;;  %2463 = vmatmul.mubr.bf16.vlgmr.msra.gmra.mrb[96].mxu1 %v2263_v63  ;;  %v2203_v8 = vmax.f32 %v2051_v1, 0.0 }
 0x555   : > { %v2057_v7 = vadd.f32 %v2056_v6, %v4443_v41  ;;  %v2204_v10 = vmax.f32 %v2053_v3, 0.0 }
 0x556   : > { %v2205_v9 = vmax.f32 %v2055_v5, 0.0 }
 0x557   : > { %v2206_v11 = vmax.f32 %v2057_v7, 0.0 }
 0x558   : > { %v2265_v12 = vpack.c.bf16 %v2205_v9, %v2203_v8 }
 0x559   : > { %v2266_v13 = vpack.c.bf16 %v2206_v11, %v2204_v10  ;;  %v2060_v14 = vpop.f32.mrb[104].mxu0 }
 0x55a   : > { %v2061_v15 = vadd.f32 %v2060_v14, %v4439_v52  ;;  %v2062_v16 = vpop.f32.mrb[105].mxu0 }
 0x55b   : > { %v2063_v17 = vadd.f32 %v2062_v16, %v4443_v41  ;;  %v2064_v18 = vpop.f32.mrb[106].mxu0  ;;  %2470 = vmatprep.mubr.bf16.mxu1 %v2266_v13 }
 0x55c   : > { %v2065_v19 = vadd.f32 %v2064_v18, %v4439_v52  ;;  %v2066_v22 = vpop.f32.mrb[107].mxu0  ;;  %2471 = vmatmul.mubr.bf16.gmra.mrb[100].mxu1 %v2265_v12  ;;  %v2207_v27 = vmax.f32 %v2061_v15, 0.0 }
 0x55d   : > { %v2067_v26 = vadd.f32 %v2066_v22, %v4443_v41  ;;  %v2208_v25 = vmax.f32 %v2063_v17, 0.0 }
 0x55e   : > { %v2209_v28 = vmax.f32 %v2065_v19, 0.0 }
 0x55f   : > { %v2210_v29 = vmax.f32 %v2067_v26, 0.0 }
 0x560   : > { %v2267_v30 = vpack.c.bf16 %v2209_v28, %v2207_v27 }
 0x561   : > { %v2268_v31 = vpack.c.bf16 %v2210_v29, %v2208_v25  ;;  %v2070_v32 = vpop.f32.mrb[108].mxu0 }
 0x562   : > { %v2071_v33 = vadd.f32 %v2070_v32, %v4439_v52  ;;  %v2072_v35 = vpop.f32.mrb[109].mxu0 }
 0x563   : > { %v2073_v36 = vadd.f32 %v2072_v35, %v4443_v41  ;;  %v2074_v24 = vpop.f32.mrb[110].mxu0  ;;  %2478 = vmatprep.mubr.bf16.mxu1 %v2268_v31 }
 0x564   : > { %v2075_v37 = vadd.f32 %v2074_v24, %v4439_v52  ;;  %v2076_v38 = vpop.f32.mrb[111].mxu0  ;;  %2479 = vmatmul.mubr.bf16.gmra.mrb[104].mxu1 %v2267_v30  ;;  %v2211_v40 = vmax.f32 %v2071_v33, 0.0 }
 0x565   : > { %v2077_v39 = vadd.f32 %v2076_v38, %v4443_v41  ;;  %v2212_v43 = vmax.f32 %v2073_v36, 0.0 }
 0x566   : > { %v2213_v42 = vmax.f32 %v2075_v37, 0.0 }
 0x567   : > { %v2214_v44 = vmax.f32 %v2077_v39, 0.0 }
 0x568   : > { %v2269_v45 = vpack.c.bf16 %v2213_v42, %v2211_v40 }
 0x569   : > { %v2270_v34 = vpack.c.bf16 %v2214_v44, %v2212_v43  ;;  %v2080_v46 = vpop.f32.mrb[112].mxu0 }
 0x56a   : > { %v2081_v47 = vadd.f32 %v2080_v46, %v4439_v52  ;;  %v2082_v48 = vpop.f32.mrb[113].mxu0 }
 0x56b   : > { %v2083_v49 = vadd.f32 %v2082_v48, %v4443_v41  ;;  %v2084_v50 = vpop.f32.mrb[114].mxu0  ;;  %2486 = vmatprep.mubr.bf16.mxu1 %v2270_v34 }
 0x56c   : > { %v2085_v51 = vadd.f32 %v2084_v50, %v4439_v52  ;;  %v2086_v53 = vpop.f32.mrb[115].mxu0  ;;  %2487 = vmatmul.mubr.bf16.gmra.mrb[108].mxu1 %v2269_v45  ;;  %v2215_v55 = vmax.f32 %v2081_v47, 0.0 }
 0x56d   : > { %v2087_v54 = vadd.f32 %v2086_v53, %v4443_v41  ;;  %v2216_v0 = vmax.f32 %v2083_v49, 0.0 }
 0x56e   : > { %v2217_v56 = vmax.f32 %v2085_v51, 0.0 }
 0x56f   : > { %v2218_v57 = vmax.f32 %v2087_v54, 0.0 }
 0x570   : > { %v2271_v58 = vpack.c.bf16 %v2217_v56, %v2215_v55 }
 0x571   : > { %v2272_v59 = vpack.c.bf16 %v2218_v57, %v2216_v0  ;;  %v2090_v60 = vpop.f32.mrb[116].mxu0 }
 0x572   : > { %v2091_v61 = vadd.f32 %v2090_v60, %v4439_v52  ;;  %v2092_v21 = vpop.f32.mrb[117].mxu0 }
 0x573   : > { %v2093_v62 = vadd.f32 %v2092_v21, %v4443_v41  ;;  %v2094_v63 = vpop.f32.mrb[118].mxu0  ;;  %2494 = vmatprep.mubr.bf16.mxu1 %v2272_v59 }
 0x574   : > { %v2095_v20 = vadd.f32 %v2094_v63, %v4439_v52  ;;  %v2096_v23 = vpop.f32.mrb[119].mxu0  ;;  %2495 = vmatmul.mubr.bf16.gmra.mrb[112].mxu1 %v2271_v58  ;;  %v2219_v2 = vmax.f32 %v2091_v61, 0.0 }
 0x575   : > { %v2097_v1 = vadd.f32 %v2096_v23, %v4443_v41  ;;  %v2220_v4 = vmax.f32 %v2093_v62, 0.0 }
 0x576   : > { %v2221_v3 = vmax.f32 %v2095_v20, 0.0 }
 0x577   : > { %v2222_v5 = vmax.f32 %v2097_v1, 0.0 }
 0x578   : > { %v2273_v6 = vpack.c.bf16 %v2221_v3, %v2219_v2 }
 0x579   : > { %v2274_v7 = vpack.c.bf16 %v2222_v5, %v2220_v4  ;;  %v2100_v8 = vpop.f32.mrb[120].mxu0 }
 0x57a   : > { %v2101_v9 = vadd.f32 %v2100_v8, %v4439_v52  ;;  %v2102_v10 = vpop.f32.mrb[121].mxu0 }
 0x57b   : > { %v2103_v11 = vadd.f32 %v2102_v10, %v4443_v41  ;;  %v2104_v12 = vpop.f32.mrb[122].mxu0  ;;  %2502 = vmatprep.mubr.bf16.mxu1 %v2274_v7 }
 0x57c   : > { %v2105_v13 = vadd.f32 %v2104_v12, %v4439_v52  ;;  %v2106_v14 = vpop.f32.mrb[123].mxu0  ;;  %2503 = vmatmul.mubr.bf16.gmra.mrb[116].mxu1 %v2273_v6  ;;  %v2223_v16 = vmax.f32 %v2101_v9, 0.0 }
 0x57d   : > { %v2107_v15 = vadd.f32 %v2106_v14, %v4443_v41  ;;  %v2224_v18 = vmax.f32 %v2103_v11, 0.0 }
 0x57e   : > { %v2225_v17 = vmax.f32 %v2105_v13, 0.0 }
 0x57f   : > { %v2226_v19 = vmax.f32 %v2107_v15, 0.0 }
 0x580   : > { %v2275_v22 = vpack.c.bf16 %v2225_v17, %v2223_v16 }
 0x581   : > { %v2276_v26 = vpack.c.bf16 %v2226_v19, %v2224_v18  ;;  %v2110_v27 = vpop.f32.mrb[124].mxu0 }
 0x582   : > { %v2111_v28 = vadd.f32 %v2110_v27, %v4439_v52  ;;  %v2112_v25 = vpop.f32.mrb[125].mxu0 }
 0x583   : > { %v2113_v29 = vadd.f32 %v2112_v25, %v4443_v41  ;;  %v2114_v30 = vpop.f32.mrb[126].mxu0  ;;  %2510 = vmatprep.mubr.bf16.mxu1 %v2276_v26 }
 0x584   : > { %v2115_v31 = vadd.f32 %v2114_v30, %v4439_v52  ;;  %v2116_v32 = vpop.f32.mrb[127].mxu0  ;;  %2511 = vmatmul.mubr.bf16.gmra.mrb[120].mxu1 %v2275_v22  ;;  %v2227_v35 = vmax.f32 %v2111_v28, 0.0 }
 0x585   : > { %v2117_v33 = vadd.f32 %v2116_v32, %v4443_v41  ;;  %v2228_v24 = vmax.f32 %v2113_v29, 0.0 }
 0x586   : > { %v2229_v36 = vmax.f32 %v2115_v31, 0.0 }
 0x587   : > { %v2230_v37 = vmax.f32 %v2117_v33, 0.0 }
 0x588   : > { %v2277_v38 = vpack.c.bf16 %v2229_v36, %v2227_v35 }
 0x589   : > { %v2278_v39 = vpack.c.bf16 %v2230_v37, %v2228_v24  ;;  %v2120_v40 = vpop.f32.mrb[128].mxu0 }
 0x58a   : > { %v2121_v42 = vadd.f32 %v2120_v40, %v4439_v52  ;;  %v2122_v43 = vpop.f32.mrb[129].mxu0 }
 0x58b   : > { %v2123_v44 = vadd.f32 %v2122_v43, %v4443_v41  ;;  %v2124_v45 = vpop.f32.mrb[130].mxu0  ;;  %2518 = vmatprep.mubr.bf16.mxu1 %v2278_v39 }
 0x58c   : > { %v2125_v34 = vadd.f32 %v2124_v45, %v4439_v52  ;;  %v2126_v46 = vpop.f32.mrb[131].mxu0  ;;  %2519 = vmatmul.mubr.bf16.gmra.mrb[124].mxu1 %v2277_v38  ;;  %v2231_v48 = vmax.f32 %v2121_v42, 0.0 }
 0x58d   : > { %v2127_v47 = vadd.f32 %v2126_v46, %v4443_v41  ;;  %v2232_v50 = vmax.f32 %v2123_v44, 0.0 }
 0x58e   : > { %v2233_v49 = vmax.f32 %v2125_v34, 0.0 }
 0x58f   : > { %v2234_v51 = vmax.f32 %v2127_v47, 0.0 }
 0x590   : > { %v2279_v53 = vpack.c.bf16 %v2233_v49, %v2231_v48 }
 0x591   : > { %v2280_v54 = vpack.c.bf16 %v2234_v51, %v2232_v50  ;;  %v2130_v55 = vpop.f32.mrb[132].mxu0 }
 0x592   : > { %v2131_v56 = vadd.f32 %v2130_v55, %v4439_v52  ;;  %v2132_v0 = vpop.f32.mrb[133].mxu0 }
 0x593   : > { %v2133_v57 = vadd.f32 %v2132_v0, %v4443_v41  ;;  %v2134_v58 = vpop.f32.mrb[134].mxu0  ;;  %2526 = vmatprep.mubr.bf16.mxu1 %v2280_v54 }
 0x594   : > { %v2135_v59 = vadd.f32 %v2134_v58, %v4439_v52  ;;  %v2136_v60 = vpop.f32.mrb[135].mxu0  ;;  %2527 = vmatmul.mubr.bf16.gmra.mrb[128].mxu1 %v2279_v53  ;;  %v2235_v21 = vmax.f32 %v2131_v56, 0.0 }
 0x595   : > { %v2137_v61 = vadd.f32 %v2136_v60, %v4443_v41  ;;  %v2236_v63 = vmax.f32 %v2133_v57, 0.0 }
 0x596   : > { %v2237_v62 = vmax.f32 %v2135_v59, 0.0 }
 0x597   : > { %v2238_v20 = vmax.f32 %v2137_v61, 0.0 }
 0x598   : > { %v2281_v23 = vpack.c.bf16 %v2237_v62, %v2235_v21 }
 0x599   : > { %v2282_v1 = vpack.c.bf16 %v2238_v20, %v2236_v63  ;;  %v2140_v2 = vpop.f32.mrb[136].mxu0 }
 0x59a   : > { %v2141_v3 = vadd.f32 %v2140_v2, %v4439_v52  ;;  %v2142_v4 = vpop.f32.mrb[137].mxu0 }
 0x59b   : > { %v2143_v5 = vadd.f32 %v2142_v4, %v4443_v41  ;;  %v2144_v6 = vpop.f32.mrb[138].mxu0  ;;  %2534 = vmatprep.mubr.bf16.mxu1 %v2282_v1 }
 0x59c   : > { %v2145_v7 = vadd.f32 %v2144_v6, %v4439_v52  ;;  %v2146_v8 = vpop.f32.mrb[139].mxu0  ;;  %2535 = vmatmul.mubr.bf16.gmra.mrb[132].mxu1 %v2281_v23  ;;  %v2239_v10 = vmax.f32 %v2141_v3, 0.0 }
 0x59d   : > { %v2147_v9 = vadd.f32 %v2146_v8, %v4443_v41  ;;  %v2240_v12 = vmax.f32 %v2143_v5, 0.0 }
 0x59e   : > { %v2241_v11 = vmax.f32 %v2145_v7, 0.0 }
 0x59f   : > { %v2242_v13 = vmax.f32 %v2147_v9, 0.0 }
 0x5a0   : > { %v2283_v14 = vpack.c.bf16 %v2241_v11, %v2239_v10 }
 0x5a1   : > { %v2284_v15 = vpack.c.bf16 %v2242_v13, %v2240_v12  ;;  %v2150_v16 = vpop.f32.mrb[140].mxu0 }
 0x5a2   : > { %v2151_v17 = vadd.f32 %v2150_v16, %v4439_v52  ;;  %v2152_v18 = vpop.f32.mrb[141].mxu0 }
 0x5a3   : > { %v2153_v19 = vadd.f32 %v2152_v18, %v4443_v41  ;;  %v2154_v22 = vpop.f32.mrb[142].mxu0  ;;  %2542 = vmatprep.mubr.bf16.mxu1 %v2284_v15 }
 0x5a4   : > { %v2155_v26 = vadd.f32 %v2154_v22, %v4439_v52  ;;  %v2156_v27 = vpop.f32.mrb[143].mxu0  ;;  %2543 = vmatmul.mubr.bf16.gmra.mrb[136].mxu1 %v2283_v14  ;;  %v2243_v25 = vmax.f32 %v2151_v17, 0.0 }
 0x5a5   : > { %v2157_v28 = vadd.f32 %v2156_v27, %v4443_v41  ;;  %v2244_v30 = vmax.f32 %v2153_v19, 0.0 }
 0x5a6   : > { %v2245_v29 = vmax.f32 %v2155_v26, 0.0 }
 0x5a7   : > { %v2246_v31 = vmax.f32 %v2157_v28, 0.0 }
 0x5a8   : > { %v2285_v32 = vpack.c.bf16 %v2245_v29, %v2243_v25 }
 0x5a9   : > { %v2286_v33 = vpack.c.bf16 %v2246_v31, %v2244_v30  ;;  %v2160_v35 = vpop.f32.mrb[144].mxu0 }
 0x5aa   : > { %v2161_v36 = vadd.f32 %v2160_v35, %v4439_v52  ;;  %v2162_v24 = vpop.f32.mrb[145].mxu0  ;;  %v3489_v35 = vld [vmem:[%s4162_s12] sm:$0xff] }
 0x5ab   : > { %v2163_v37 = vadd.f32 %v2162_v24, %v4443_v41  ;;  %v2164_v38 = vpop.f32.mrb[146].mxu0  ;;  %2550 = vmatprep.mubr.bf16.mxu1 %v2286_v33 }
 0x5ac   : > { %v2165_v39 = vadd.f32 %v2164_v38, %v4439_v52  ;;  %v2166_v40 = vpop.f32.mrb[147].mxu0  ;;  %2551 = vmatmul.mubr.bf16.gmra.mrb[140].mxu1 %v2285_v32  ;;  %v2247_v43 = vmax.f32 %v2161_v36, 0.0 }
 0x5ad   : > { %v2167_v42 = vadd.f32 %v2166_v40, %v4443_v41  ;;  %v2248_v45 = vmax.f32 %v2163_v37, 0.0  ;;  %v3490_v37 = vld [vmem:[%s4162_s12 + $0x8] sm:$0xff] }
 0x5ae   : > { %v2249_v44 = vmax.f32 %v2165_v39, 0.0 }
 0x5af   : > { %v2250_v34 = vmax.f32 %v2167_v42, 0.0 }
 0x5b0   : > { %v2287_v46 = vpack.c.bf16 %v2249_v44, %v2247_v43 }
 0x5b1   : > { %v2288_v47 = vpack.c.bf16 %v2250_v34, %v2248_v45  ;;  %v2170_v48 = vpop.f32.mrb[148].mxu0 }
 0x5b2   : > { %v2171_v49 = vadd.f32 %v2170_v48, %v4439_v52  ;;  %v2172_v50 = vpop.f32.mrb[149].mxu0 }
 0x5b3   : > { %v2173_v51 = vadd.f32 %v2172_v50, %v4443_v41  ;;  %v2174_v53 = vpop.f32.mrb[150].mxu0  ;;  %2558 = vmatprep.mubr.bf16.mxu1 %v2288_v47 }
 0x5b4   : > { %v2175_v54 = vadd.f32 %v2174_v53, %v4439_v52  ;;  %v2176_v55 = vpop.f32.mrb[151].mxu0  ;;  %2559 = vmatmul.mubr.bf16.gmra.mrb[144].mxu1 %v2287_v46  ;;  %v2251_v0 = vmax.f32 %v2171_v49, 0.0  ;;  %v3491_v46 = vld [vmem:[%s4162_s12 + $0x10] sm:$0xff]  ;;  %v3492_v49 = vld [vmem:[%s4162_s12 + $0x18] sm:$0xff] }
 0x5b5   : > { %v2177_v56 = vadd.f32 %v2176_v55, %v4443_v41  ;;  %v2252_v58 = vmax.f32 %v2173_v51, 0.0 }
 0x5b6   : > { %v2253_v57 = vmax.f32 %v2175_v54, 0.0 }
 0x5b7   : > { %v2254_v59 = vmax.f32 %v2177_v56, 0.0 }
 0x5b8   : > { %v2289_v60 = vpack.c.bf16 %v2253_v57, %v2251_v0 }
 0x5b9   : > { %v2290_v61 = vpack.c.bf16 %v2254_v59, %v2252_v58  ;;  %v2180_v21 = vpop.f32.mrb[152].mxu0  ;;  %v3493_v58 = vld [vmem:[%s4162_s12 + $0x20] sm:$0xff] }
 0x5ba   : > { %v2181_v62 = vadd.f32 %v2180_v21, %v4439_v52  ;;  %v2182_v63 = vpop.f32.mrb[153].mxu0 }
 0x5bb   : > { %v2183_v20 = vadd.f32 %v2182_v63, %v4443_v41  ;;  %v2184_v23 = vpop.f32.mrb[154].mxu0  ;;  %2566 = vmatprep.mubr.bf16.mxu1 %v2290_v61  ;;  %v3494_v61 = vld [vmem:[%s4162_s12 + $0x28] sm:$0xff] }
 0x5bc   : > { %v2185_v1 = vadd.f32 %v2184_v23, %v4439_v52  ;;  %v2186_v2 = vpop.f32.mrb[155].mxu0  ;;  %2567 = vmatmul.mubr.bf16.gmra.mrb[148].mxu1 %v2289_v60  ;;  %v2255_v4 = vmax.f32 %v2181_v62, 0.0 }
 0x5bd   : > { %v2187_v3 = vadd.f32 %v2186_v2, %v4443_v41  ;;  %v2256_v6 = vmax.f32 %v2183_v20, 0.0 }
 0x5be   : > { %v2257_v5 = vmax.f32 %v2185_v1, 0.0 }
 0x5bf   : > { %v2258_v7 = vmax.f32 %v2187_v3, 0.0 }
 0x5c0   : > { %v2291_v8 = vpack.c.bf16 %v2257_v5, %v2255_v4  ;;  %v3495_v4 = vld [vmem:[%s4162_s12 + $0x30] sm:$0xff] }
 0x5c1   : > { %v2292_v9 = vpack.c.bf16 %v2258_v7, %v2256_v6  ;;  %v2190_v10 = vpop.f32.mrb[156].mxu0  ;;  %v3496_v7 = vld [vmem:[%s4162_s12 + $0x38] sm:$0xff] }
 0x5c2   : > { %v2191_v11 = vadd.f32 %v2190_v10, %v4439_v52  ;;  %v2192_v12 = vpop.f32.mrb[157].mxu0 }
 0x5c3   : > { %v2193_v13 = vadd.f32 %v2192_v12, %v4443_v41  ;;  %v2194_v14 = vpop.f32.mrb[158].mxu0  ;;  %2574 = vmatprep.mubr.bf16.mxu1 %v2292_v9 }
 0x5c4   : > { %v2195_v15 = vadd.f32 %v2194_v14, %v4439_v52  ;;  %v2196_v16 = vpop.f32.mrb[159].mxu0  ;;  %2575 = vmatmul.mubr.bf16.gmra.mrb[152].mxu1 %v2291_v8  ;;  %v2259_v18 = vmax.f32 %v2191_v11, 0.0  ;;  %v4512_v52 = vld [vmem:[%s4720_s13] ss:$0 sm:$0xff] }
 0x5c5   : > { %v2197_v17 = vadd.f32 %v2196_v16, %v4443_v41  ;;  %v2260_v22 = vmax.f32 %v2193_v13, 0.0  ;;  %v3497_v16 = vld [vmem:[%s4162_s12 + $0x40] sm:$0xff] }
 0x5c6   : > { %v2261_v19 = vmax.f32 %v2195_v15, 0.0 }
 0x5c7   : > { %v2262_v26 = vmax.f32 %v2197_v17, 0.0 }
 0x5c8   : > { %v2293_v27 = vpack.c.bf16 %v2261_v19, %v2259_v18  ;;  %v3498_v19 = vld [vmem:[%s4162_s12 + $0x48] sm:$0xff] }
 0x5c9   : > { %v2294_v28 = vpack.c.bf16 %v2262_v26, %v2260_v22 }
 0x5cb   : > { %2582 = vmatprep.mubr.bf16.mxu1 %v2294_v28 }
 0x5cc   : > { %2583 = vmatmul.mubr.bf16.gmra.mrb[156].mxu1 %v2293_v27 }
 0x627   : > { %v3087_v25 = vpop.f32.mrb[96].mxu1 }
 0x628   : > { %v3088_v29 = vpop.f32.mrb[97].mxu1 }
 0x629   : > { %v3089_v30 = vadd.f32 %v3088_v29, %v3087_v25  ;;  %v3090_v41 = vpop.f32.mrb[98].mxu1 }
 0x62a   : > { %v3091_v31 = vpop.f32.mrb[99].mxu1 }
 0x62b   : > { %v2465_v32 = vadd.f32 %v3089_v30, %v4512_v52  ;;  %v3092_v33 = vadd.f32 %v3091_v31, %v3090_v41  ;;  %v3499_v31 = vld [vmem:[%s4162_s12 + $0x50] sm:$0xff] }
 0x62d   : > { %v2591_v36 = vadd.f32 %v3489_v35, %v2465_v32  ;;  %v2468_v24 = vadd.f32 %v3092_v33, %v4512_v52  ;;  %v3500_v35 = vld [vmem:[%s4162_s12 + $0x58] sm:$0xff] }
 0x62f   : > { %2623 = vst [vmem:[%s4519_s24] sm:$0xff] %v2591_v36  ;;  %v2592_v38 = vadd.f32 %v3490_v37, %v2468_v24  ;;  %v3093_v39 = vpop.f32.mrb[100].mxu1 }
 0x630   : > { %v3094_v40 = vpop.f32.mrb[101].mxu1 }
 0x631   : > { %2624 = vst [vmem:[%s4519_s24 + $0x8] sm:$0xff] %v2592_v38  ;;  %v3095_v42 = vadd.f32 %v3094_v40, %v3093_v39  ;;  %v3096_v43 = vpop.f32.mrb[102].mxu1 }
 0x632   : > { %v3097_v44 = vpop.f32.mrb[103].mxu1 }
 0x633   : > { %v2473_v45 = vadd.f32 %v3095_v42, %v4512_v52  ;;  %v3098_v34 = vadd.f32 %v3097_v44, %v3096_v43  ;;  %v3501_v44 = vld [vmem:[%s4162_s12 + $0x60] sm:$0xff] }
 0x635   : > { %v2593_v47 = vadd.f32 %v3491_v46, %v2473_v45  ;;  %v2476_v48 = vadd.f32 %v3098_v34, %v4512_v52  ;;  %v3502_v46 = vld [vmem:[%s4162_s12 + $0x68] sm:$0xff] }
 0x637   : > { %2625 = vst [vmem:[%s4519_s24 + $0x10] sm:$0xff] %v2593_v47  ;;  %v2594_v50 = vadd.f32 %v3492_v49, %v2476_v48  ;;  %v3099_v51 = vpop.f32.mrb[104].mxu1 }
 0x638   : > { %v3100_v53 = vpop.f32.mrb[105].mxu1 }
 0x639   : > { %2626 = vst [vmem:[%s4519_s24 + $0x18] sm:$0xff] %v2594_v50  ;;  %v3101_v54 = vadd.f32 %v3100_v53, %v3099_v51  ;;  %v3102_v55 = vpop.f32.mrb[106].mxu1 }
 0x63a   : > { %v3103_v56 = vpop.f32.mrb[107].mxu1 }
 0x63b   : > { %v2481_v0 = vadd.f32 %v3101_v54, %v4512_v52  ;;  %v3104_v57 = vadd.f32 %v3103_v56, %v3102_v55  ;;  %v3503_v56 = vld [vmem:[%s4162_s12 + $0x70] sm:$0xff] }
 0x63d   : > { %v2595_v59 = vadd.f32 %v3493_v58, %v2481_v0  ;;  %v2484_v60 = vadd.f32 %v3104_v57, %v4512_v52  ;;  %v3504_v58 = vld [vmem:[%s4162_s12 + $0x78] sm:$0xff] }
 0x63f   : > { %2627 = vst [vmem:[%s4519_s24 + $0x20] sm:$0xff] %v2595_v59  ;;  %v2596_v21 = vadd.f32 %v3494_v61, %v2484_v60  ;;  %v3105_v62 = vpop.f32.mrb[108].mxu1 }
 0x640   : > { %v3106_v63 = vpop.f32.mrb[109].mxu1 }
 0x641   : > { %2628 = vst [vmem:[%s4519_s24 + $0x28] sm:$0xff] %v2596_v21  ;;  %v3107_v20 = vadd.f32 %v3106_v63, %v3105_v62  ;;  %v3108_v23 = vpop.f32.mrb[110].mxu1 }
 0x642   : > { %v3109_v1 = vpop.f32.mrb[111].mxu1 }
 0x643   : > { %v2489_v2 = vadd.f32 %v3107_v20, %v4512_v52  ;;  %v3110_v3 = vadd.f32 %v3109_v1, %v3108_v23  ;;  %v3505_v1 = vld [vmem:[%s4162_s12 + $0x80] sm:$0xff] }
 0x645   : > { %v2597_v5 = vadd.f32 %v3495_v4, %v2489_v2  ;;  %v2492_v6 = vadd.f32 %v3110_v3, %v4512_v52  ;;  %v3506_v4 = vld [vmem:[%s4162_s12 + $0x88] sm:$0xff] }
 0x647   : > { %2629 = vst [vmem:[%s4519_s24 + $0x30] sm:$0xff] %v2597_v5  ;;  %v2598_v8 = vadd.f32 %v3496_v7, %v2492_v6  ;;  %v3111_v9 = vpop.f32.mrb[112].mxu1 }
 0x648   : > { %v3112_v10 = vpop.f32.mrb[113].mxu1 }
 0x649   : > { %2630 = vst [vmem:[%s4519_s24 + $0x38] sm:$0xff] %v2598_v8  ;;  %v3113_v11 = vadd.f32 %v3112_v10, %v3111_v9  ;;  %v3114_v12 = vpop.f32.mrb[114].mxu1 }
 0x64a   : > { %v3115_v13 = vpop.f32.mrb[115].mxu1 }
 0x64b   : > { %v2497_v14 = vadd.f32 %v3113_v11, %v4512_v52  ;;  %v3116_v15 = vadd.f32 %v3115_v13, %v3114_v12  ;;  %v3507_v13 = vld [vmem:[%s4162_s12 + $0x90] sm:$0xff] }
 0x64d   : > { %v2599_v17 = vadd.f32 %v3497_v16, %v2497_v14  ;;  %v2500_v18 = vadd.f32 %v3116_v15, %v4512_v52  ;;  %v3508_v16 = vld [vmem:[%s4162_s12 + $0x98] sm:$0xff] }
 0x64f   : > { %2631 = vst [vmem:[%s4519_s24 + $0x40] sm:$0xff] %v2599_v17  ;;  %v2600_v22 = vadd.f32 %v3498_v19, %v2500_v18  ;;  %v3117_v26 = vpop.f32.mrb[116].mxu1 }
 0x650   : > { %v3118_v27 = vpop.f32.mrb[117].mxu1 }
 0x651   : > { %2632 = vst [vmem:[%s4519_s24 + $0x48] sm:$0xff] %v2600_v22  ;;  %v3119_v28 = vadd.f32 %v3118_v27, %v3117_v26  ;;  %v3120_v25 = vpop.f32.mrb[118].mxu1 }
 0x652   : > { %v3121_v29 = vpop.f32.mrb[119].mxu1 }
 0x653   : > { %v2505_v30 = vadd.f32 %v3119_v28, %v4512_v52  ;;  %v3122_v41 = vadd.f32 %v3121_v29, %v3120_v25  ;;  %v3509_v29 = vld [vmem:[%s4162_s12 + $0xa0] sm:$0xff] }
 0x655   : > { %v2601_v32 = vadd.f32 %v3499_v31, %v2505_v30  ;;  %v2508_v33 = vadd.f32 %v3122_v41, %v4512_v52  ;;  %v3510_v31 = vld [vmem:[%s4162_s12 + $0xa8] sm:$0xff] }
 0x657   : > { %2633 = vst [vmem:[%s4519_s24 + $0x50] sm:$0xff] %v2601_v32  ;;  %v2602_v36 = vadd.f32 %v3500_v35, %v2508_v33  ;;  %v3123_v24 = vpop.f32.mrb[120].mxu1 }
 0x658   : > { %v3124_v37 = vpop.f32.mrb[121].mxu1 }
 0x659   : > { %2634 = vst [vmem:[%s4519_s24 + $0x58] sm:$0xff] %v2602_v36  ;;  %v3125_v38 = vadd.f32 %v3124_v37, %v3123_v24  ;;  %v3126_v39 = vpop.f32.mrb[122].mxu1 }
 0x65a   : > { %v3127_v40 = vpop.f32.mrb[123].mxu1 }
 0x65b   : > { %v2513_v42 = vadd.f32 %v3125_v38, %v4512_v52  ;;  %v3128_v43 = vadd.f32 %v3127_v40, %v3126_v39  ;;  %v3511_v40 = vld [vmem:[%s4162_s12 + $0xb0] sm:$0xff] }
 0x65d   : > { %v2603_v45 = vadd.f32 %v3501_v44, %v2513_v42  ;;  %v2516_v34 = vadd.f32 %v3128_v43, %v4512_v52  ;;  %v3512_v44 = vld [vmem:[%s4162_s12 + $0xb8] sm:$0xff] }
 0x65f   : > { %2635 = vst [vmem:[%s4519_s24 + $0x60] sm:$0xff] %v2603_v45  ;;  %v2604_v47 = vadd.f32 %v3502_v46, %v2516_v34  ;;  %v3129_v48 = vpop.f32.mrb[124].mxu1 }
 0x660   : > { %v3130_v49 = vpop.f32.mrb[125].mxu1 }
 0x661   : > { %2636 = vst [vmem:[%s4519_s24 + $0x68] sm:$0xff] %v2604_v47  ;;  %v3131_v50 = vadd.f32 %v3130_v49, %v3129_v48  ;;  %v3132_v51 = vpop.f32.mrb[126].mxu1 }
 0x662   : > { %v3133_v53 = vpop.f32.mrb[127].mxu1 }
 0x663   : > { %v2521_v54 = vadd.f32 %v3131_v50, %v4512_v52  ;;  %v3134_v55 = vadd.f32 %v3133_v53, %v3132_v51  ;;  %v3513_v53 = vld [vmem:[%s4162_s12 + $0xc0] sm:$0xff] }
 0x665   : > { %v2605_v0 = vadd.f32 %v3503_v56, %v2521_v54  ;;  %v2524_v57 = vadd.f32 %v3134_v55, %v4512_v52  ;;  %v3514_v56 = vld [vmem:[%s4162_s12 + $0xc8] sm:$0xff] }
 0x667   : > { %2637 = vst [vmem:[%s4519_s24 + $0x70] sm:$0xff] %v2605_v0  ;;  %v2606_v59 = vadd.f32 %v3504_v58, %v2524_v57  ;;  %v3135_v60 = vpop.f32.mrb[128].mxu1 }
 0x668   : > { %v3136_v61 = vpop.f32.mrb[129].mxu1 }
 0x669   : > { %2638 = vst [vmem:[%s4519_s24 + $0x78] sm:$0xff] %v2606_v59  ;;  %v3137_v21 = vadd.f32 %v3136_v61, %v3135_v60  ;;  %v3138_v62 = vpop.f32.mrb[130].mxu1 }
 0x66a   : > { %v3139_v63 = vpop.f32.mrb[131].mxu1 }
 0x66b   : > { %v2529_v20 = vadd.f32 %v3137_v21, %v4512_v52  ;;  %v3140_v23 = vadd.f32 %v3139_v63, %v3138_v62  ;;  %v3515_v63 = vld [vmem:[%s4162_s12 + $0xd0] sm:$0xff] }
 0x66d   : > { %v2607_v2 = vadd.f32 %v3505_v1, %v2529_v20  ;;  %v2532_v3 = vadd.f32 %v3140_v23, %v4512_v52  ;;  %v3516_v1 = vld [vmem:[%s4162_s12 + $0xd8] sm:$0xff] }
 0x66f   : > { %2639 = vst [vmem:[%s4519_s24 + $0x80] sm:$0xff] %v2607_v2  ;;  %v2608_v5 = vadd.f32 %v3506_v4, %v2532_v3  ;;  %v3141_v6 = vpop.f32.mrb[132].mxu1 }
 0x670   : > { %v3142_v7 = vpop.f32.mrb[133].mxu1 }
 0x671   : > { %2640 = vst [vmem:[%s4519_s24 + $0x88] sm:$0xff] %v2608_v5  ;;  %v3143_v8 = vadd.f32 %v3142_v7, %v3141_v6  ;;  %v3144_v9 = vpop.f32.mrb[134].mxu1 }
 0x672   : > { %v3145_v10 = vpop.f32.mrb[135].mxu1 }
 0x673   : > { %v2537_v11 = vadd.f32 %v3143_v8, %v4512_v52  ;;  %v3146_v12 = vadd.f32 %v3145_v10, %v3144_v9  ;;  %v3517_v10 = vld [vmem:[%s4162_s12 + $0xe0] sm:$0xff] }
 0x675   : > { %v2609_v14 = vadd.f32 %v3507_v13, %v2537_v11  ;;  %v2540_v15 = vadd.f32 %v3146_v12, %v4512_v52  ;;  %v3518_v13 = vld [vmem:[%s4162_s12 + $0xe8] sm:$0xff] }
 0x677   : > { %2641 = vst [vmem:[%s4519_s24 + $0x90] sm:$0xff] %v2609_v14  ;;  %v2610_v17 = vadd.f32 %v3508_v16, %v2540_v15  ;;  %v3147_v18 = vpop.f32.mrb[136].mxu1 }
 0x678   : > { %v3148_v19 = vpop.f32.mrb[137].mxu1 }
 0x679   : > { %2642 = vst [vmem:[%s4519_s24 + $0x98] sm:$0xff] %v2610_v17  ;;  %v3149_v22 = vadd.f32 %v3148_v19, %v3147_v18  ;;  %v3150_v26 = vpop.f32.mrb[138].mxu1 }
 0x67a   : > { %v3151_v27 = vpop.f32.mrb[139].mxu1 }
 0x67b   : > { %v2545_v28 = vadd.f32 %v3149_v22, %v4512_v52  ;;  %v3152_v25 = vadd.f32 %v3151_v27, %v3150_v26  ;;  %v3519_v27 = vld [vmem:[%s4162_s12 + $0xf0] sm:$0xff] }
 0x67d   : > { %v2611_v30 = vadd.f32 %v3509_v29, %v2545_v28  ;;  %v2548_v41 = vadd.f32 %v3152_v25, %v4512_v52  ;;  %v3520_v29 = vld [vmem:[%s4162_s12 + $0xf8] sm:$0xff] }
 0x67f   : > { %2643 = vst [vmem:[%s4519_s24 + $0xa0] sm:$0xff] %v2611_v30  ;;  %v2612_v32 = vadd.f32 %v3510_v31, %v2548_v41  ;;  %v3153_v33 = vpop.f32.mrb[140].mxu1 }
 0x680   : > { %v3154_v35 = vpop.f32.mrb[141].mxu1 }
 0x681   : > { %2644 = vst [vmem:[%s4519_s24 + $0xa8] sm:$0xff] %v2612_v32  ;;  %v3155_v36 = vadd.f32 %v3154_v35, %v3153_v33  ;;  %v3156_v24 = vpop.f32.mrb[142].mxu1 }
 0x682   : > { %v3157_v37 = vpop.f32.mrb[143].mxu1 }
 0x683   : > { %v2553_v38 = vadd.f32 %v3155_v36, %v4512_v52  ;;  %v3158_v39 = vadd.f32 %v3157_v37, %v3156_v24 }
 0x685   : > { %v2613_v42 = vadd.f32 %v3511_v40, %v2553_v38  ;;  %v2556_v43 = vadd.f32 %v3158_v39, %v4512_v52 }
 0x687   : > { %2645 = vst [vmem:[%s4519_s24 + $0xb0] sm:$0xff] %v2613_v42  ;;  %v2614_v45 = vadd.f32 %v3512_v44, %v2556_v43  ;;  %v3159_v34 = vpop.f32.mrb[144].mxu1 }
 0x688   : > { %v3160_v46 = vpop.f32.mrb[145].mxu1 }
 0x689   : > { %2646 = vst [vmem:[%s4519_s24 + $0xb8] sm:$0xff] %v2614_v45  ;;  %v3161_v47 = vadd.f32 %v3160_v46, %v3159_v34  ;;  %v3162_v48 = vpop.f32.mrb[146].mxu1 }
 0x68a   : > { %v3163_v49 = vpop.f32.mrb[147].mxu1 }
 0x68b   : > { %v2561_v50 = vadd.f32 %v3161_v47, %v4512_v52  ;;  %v3164_v51 = vadd.f32 %v3163_v49, %v3162_v48 }
 0x68d   : > { %v2615_v54 = vadd.f32 %v3513_v53, %v2561_v50  ;;  %v2564_v55 = vadd.f32 %v3164_v51, %v4512_v52 }
 0x68f   : > { %2647 = vst [vmem:[%s4519_s24 + $0xc0] sm:$0xff] %v2615_v54  ;;  %v2616_v0 = vadd.f32 %v3514_v56, %v2564_v55  ;;  %v3165_v57 = vpop.f32.mrb[148].mxu1 }
 0x690   : > { %v3166_v58 = vpop.f32.mrb[149].mxu1 }
 0x691   : > { %2648 = vst [vmem:[%s4519_s24 + $0xc8] sm:$0xff] %v2616_v0  ;;  %v3167_v59 = vadd.f32 %v3166_v58, %v3165_v57  ;;  %v3168_v60 = vpop.f32.mrb[150].mxu1 }
 0x692   : > { %v3169_v61 = vpop.f32.mrb[151].mxu1 }
 0x693   : > { %v2569_v21 = vadd.f32 %v3167_v59, %v4512_v52  ;;  %v3170_v62 = vadd.f32 %v3169_v61, %v3168_v60 }
 0x695   : > { %v2617_v20 = vadd.f32 %v3515_v63, %v2569_v21  ;;  %v2572_v23 = vadd.f32 %v3170_v62, %v4512_v52 }
 0x697   : > { %2649 = vst [vmem:[%s4519_s24 + $0xd0] sm:$0xff] %v2617_v20  ;;  %v2618_v2 = vadd.f32 %v3516_v1, %v2572_v23  ;;  %v3171_v3 = vpop.f32.mrb[152].mxu1 }
 0x698   : > { %v3172_v4 = vpop.f32.mrb[153].mxu1 }
 0x699   : > { %2650 = vst [vmem:[%s4519_s24 + $0xd8] sm:$0xff] %v2618_v2  ;;  %v3173_v5 = vadd.f32 %v3172_v4, %v3171_v3  ;;  %v3174_v6 = vpop.f32.mrb[154].mxu1 }
 0x69a   : > { %v3175_v7 = vpop.f32.mrb[155].mxu1 }
 0x69b   : > { %v2577_v8 = vadd.f32 %v3173_v5, %v4512_v52  ;;  %v3176_v9 = vadd.f32 %v3175_v7, %v3174_v6 }
 0x69d   : > { %v2619_v11 = vadd.f32 %v3517_v10, %v2577_v8  ;;  %v2580_v12 = vadd.f32 %v3176_v9, %v4512_v52 }
 0x69f   : > { %2651 = vst [vmem:[%s4519_s24 + $0xe0] sm:$0xff] %v2619_v11  ;;  %v2620_v14 = vadd.f32 %v3518_v13, %v2580_v12  ;;  %v3177_v15 = vpop.f32.mrb[156].mxu1 }
 0x6a0   : > { %v3178_v16 = vpop.f32.mrb[157].mxu1 }
 0x6a1   : > { %2652 = vst [vmem:[%s4519_s24 + $0xe8] sm:$0xff] %v2620_v14  ;;  %v3179_v17 = vadd.f32 %v3178_v16, %v3177_v15  ;;  %v3180_v18 = vpop.f32.mrb[158].mxu1 }
 0x6a2   : > { %v3181_v19 = vpop.f32.mrb[159].mxu1 }
 0x6a3   : > { %v2585_v22 = vadd.f32 %v3179_v17, %v4512_v52  ;;  %v3182_v26 = vadd.f32 %v3181_v19, %v3180_v18 }
 0x6a5   : > { %v2621_v28 = vadd.f32 %v3519_v27, %v2585_v22  ;;  %v2588_v25 = vadd.f32 %v3182_v26, %v4512_v52 }
 0x6a7   : > { %2653 = vst [vmem:[%s4519_s24 + $0xf0] sm:$0xff] %v2621_v28  ;;  %v2622_v30 = vadd.f32 %v3520_v29, %v2588_v25 }
 0x6a9   : > { %2654 = vst [vmem:[%s4519_s24 + $0xf8] sm:$0xff] %v2622_v30 }
 0x6aa   : > { %3732 = shalt.err (!%p3729_p8)
}
 0x6ab   : > { %s3733_s12 = scalar_lea.hbm %s4616_s6, 4096  ;;  %s3737_s29 = scalar_lea.hbm %s4721_s1, 8192 }
 0x6ac   : > { %p3734_p7 = scmp.ne.s32.totalorder %s4616_s6, %s3733_s12  ;;  %p3738_p3 = scmp.lt.u32.totalorder %s4616_s6, %s4721_s1 }
 0x6ad   : > { %p3739_p0 = scmp.lt.u32.totalorder %s3737_s29, %s3733_s12  ;;  %p3741_p6 = scmp.lt.u32.totalorder %s3733_s12, %s4616_s6 }
 0x6ae   : > { %p3735_p9 = pnand %p3734_p7, %p4722_p5 }
 0x6af   : > { %p3740_p2 = por %p3739_p0, %p3738_p3 }
 0x6b0   : > { %p3736_p4 = pneg %p3735_p9 }
 0x6b1   : > { %p3742_p10 = por %p3741_p6, %p3740_p2 }
 0x6b3   : > { %p3743_p1 = pnand %p3742_p10, %p3736_p4 }
 0x6b5   : > { %3746 = shalt.err (!%p3743_p1)
}
 0x6b6   : > { %s3812_s15 = smov 128   ;;  %s3813_s18 = smov 8  }
 0x6b7   : > { %3305 = dma.vmem_to_hbm [thread:$0]  (%p4722_p5), %s4618_s22, 4096, %s4616_s6, %s2656_s14, %s3812_s15, %s3812_s15, %s3813_s18  }
 0x6b8 PF: > { %s2684_s10 = sand.u32 1, %s3785_s25   ;;  %p4723_p11 = scmp.ne.s32.totalorder %s4707_s8, 0 }
 0x6b9   : > { %p4724_p12 = scmp.ge.s32.totalorder %s3797_s28, 2  ;;  %s2685_s23 = scalar_lea.sflag [#allocation4], %s2684_s10 }
 0x6bb   : > { %p3331_p13 = pnand %p4724_p12, %p4723_p11 }
 0x6bd   : > { %3780 = dma.done.wait (!%p3331_p13), %s2685_s23, 4096  }
 0x6be   : > { %3782 = vsyncadd (!%p3331_p13), %s2685_s23, 4294963200  ;;  %p29_p8 = scmp.ge.s32.totalorder %s4074_s16, 4   ;;  %s4725_s25 = smov %s3789_s26 }
 0x6bf   : > { %s4726_s26 = smov %s3793_s27  ;;  %s4727_s27 = smov %s4085_s21 }
 0x6c0   : > { %s4728_s28 = smov %s4074_s16  ;;  %31 = sbr.rel (!%p29_p8) target bundleno = 15 (0xf), region = 141 }
 0x6c7   :  { %2690 = vsyncpa [#allocation3], 1 }
 0x6c8   :  { %2692 = vsyncpa [#allocation3 + $0x1], 1 }
 0x6c9   :  { %2693 = vsyncpa [#allocation6], 1 }
 0x6ca   :  { %2694 = vsyncpa [#allocation9], 1 }
 0x6cb   :  { %2695 = vsyncpa [#allocation12], 1 }
 0x6cc   :  { %2696 = vsyncpa [#allocation4], 1 }
 0x6cd   :  { %2698 = vsyncpa [#allocation4 + $0x1], 1 }

</bundles_post_ra>
